<compile_context>
chip_gen: v7x
topology: tpu7x:2x2x1
jax: 0.10.0
libtpu: 0.0.40
codegen_flags: <defaults>
</compile_context>

<pallas_src>
import functools

import jax
import jax.numpy as jnp
from jax import lax
from jax.experimental import pallas as pl
from jax.experimental.pallas import tpu as pltpu


LPAD = 128    # lane padding per image segment (>= 2*(W+1)); 128 keeps interiors aligned
NB_CAP = 4    # max images fused per grid step


def _ceil8(n):
    return ((n + 7) // 8) * 8


def _pick_nb(n):
    """Largest divisor of n that is <= NB_CAP and keeps >= 2 grid steps."""
    best = 1
    for d in range(1, min(NB_CAP, n) + 1):
        if n % d == 0 and (n // d >= 2 or n < 2):
            best = d
    return best


# ----------------------------------------------------------------------------
# Weight-slab layout (shared by the packer and the kernel; offsets are static)
# ----------------------------------------------------------------------------
def slab_layout(ci, co):
    crow_i, crow_o = _ceil8(ci), _ceil8(co)
    entries = [
        ('w1', co, 9 * crow_i), ('bb1', co, 1),
        ('w2', co, 9 * crow_o), ('bb2', co, 1),
        ('w5', co, 25 * crow_i), ('bb5', co, 1),
        ('ct1_w', ci, co), ('ct1_b', ci, 1),
        ('ct2_w', ci, co), ('ct2_b', ci, 1),
        ('b3_w', ci, ci), ('b3_b', ci, 1),
        ('ct3_w', ci, 3 * ci), ('ct3_b', ci, 1),
        ('ct4_w', co, ci), ('ct4_b', co, 1),
    ]
    offs, off = {}, 0
    for name, r, w in entries:
        offs[name] = (off, r, w)
        off += w
    rows = _ceil8(max(ci, co))
    width = ((off + 127) // 128) * 128
    return offs, rows, width


# ----------------------------------------------------------------------------
# Fused MDFC_3 forward kernel (Nb images per grid step)
# ----------------------------------------------------------------------------
def _mdfc3_kernel(offs, ci, co, H, W, Nb,
                  x_ref, slab_ref, o_ref,
                  xpad_ref, hpad_ref, patch_ref):
    HW = H * W
    SEG = HW + 2 * LPAD
    f32 = jnp.float32
    crow_i = xpad_ref.shape[0]
    crow_o = hpad_ref.shape[0]

    def relu(v):
        return jnp.maximum(v, 0.0)

    def dotf(a, b):
        return jnp.dot(a, b, preferred_element_type=f32)

    def w_mat(name):
        off, r, w = offs[name]
        return slab_ref[0:r, off:off + w]

    # Zero ONLY the pad regions of the padded row buffers; interiors are fully
    # rewritten below.  Done every step (cheap: 4*Nb small aligned stores) so
    # the kernel stays correct when the "parallel" grid axis is sharded across
    # TensorCores (a core may never execute program_id == 0).
    zci = jnp.zeros((crow_i, LPAD), f32)
    zco = jnp.zeros((crow_o, LPAD), f32)
    for b in range(Nb):
        s0 = b * SEG
        xpad_ref[:, s0:s0 + LPAD] = zci
        xpad_ref[:, s0 + LPAD + HW:s0 + SEG] = zci
        hpad_ref[:, s0:s0 + LPAD] = zco
        hpad_ref[:, s0 + LPAD + HW:s0 + SEG] = zco

    # Hoisted column-wrap masks, shared by every tap of every conv.
    col = lax.broadcasted_iota(jnp.int32, (1, HW), 1) % W
    masks = {dx: (col < (W - dx)) if dx > 0 else (col >= -dx)
             for dx in (-2, -1, 1, 2)}

    x8 = x_ref[...]                    # (crow_i, Nb*HW); pad channels are zero
    x = x8[0:ci, :]                    # true channels  (ci, Nb*HW)

    # Write x interiors into the padded row buffer (pads already zero).
    for b in range(Nb):
        xpad_ref[:, b * SEG + LPAD:b * SEG + LPAD + HW] = x8[:, b * HW:(b + 1) * HW]

    def conv(pad_ref, K, wname, bname):
        """KxK SAME conv via im2col: aligned tap stores + one matmul / image."""
        crow = pad_ref.shape[0]
        r = K // 2
        w = w_mat(wname)                                   # (co, K*K*crow)
        pieces = []
        for b in range(Nb):
            t = 0
            for dy in range(-r, r + 1):
                for dx in range(-r, r + 1):
                    start = b * SEG + LPAD + dy * W + dx
                    v = pad_ref[:, start:start + HW]       # (crow, HW)
                    if dx:
                        v = jnp.where(masks[dx], v, 0.0)   # horizontal wrap mask
                    patch_ref[t * crow:(t + 1) * crow, :] = v
                    t += 1
            pieces.append(dotf(w, patch_ref[0:K * K * crow, :]))
        y = pieces[0] if Nb == 1 else jnp.concatenate(pieces, axis=1)
        return y + w_mat(bname)

    # --- branch 1 conv #1 (3x3 on x) and branch 2 conv (5x5 on x)
    h = relu(conv(xpad_ref, 3, 'w1', 'bb1'))               # (co, Nb*HW)
    g = relu(conv(xpad_ref, 5, 'w5', 'bb5'))               # (co, Nb*HW)

    # --- branch 1 conv #2 (3x3 on h)
    for b in range(Nb):
        hpad_ref[:, b * SEG + LPAD:b * SEG + LPAD + HW] = h[:, b * HW:(b + 1) * HW]
    h2 = relu(conv(hpad_ref, 3, 'w2', 'bb2'))              # (co, Nb*HW)

    # --- 1x1 channel-tran branches (residual + relu)
    b1 = relu(x + dotf(w_mat('ct1_w'), h2) + w_mat('ct1_b'))
    b2 = relu(x + dotf(w_mat('ct2_w'), g) + w_mat('ct2_b'))   # cat((g,g)) folded
    b3 = dotf(w_mat('b3_w'), x) + w_mat('b3_b')

    # --- channel_tran_3 over cat([b1,b2,b3]) as three accumulated matmuls
    ct3w = w_mat('ct3_w')                                  # (ci, 3*ci)
    t3 = (dotf(ct3w[:, 0 * ci:1 * ci], b1)
          + dotf(ct3w[:, 1 * ci:2 * ci], b2)
          + dotf(ct3w[:, 2 * ci:3 * ci], b3)
          + w_mat('ct3_b'))
    bc = relu(x + t3)

    # --- channel_tran_4
    o_ref[...] = (dotf(w_mat('ct4_w'), bc) + w_mat('ct4_b')).astype(o_ref.dtype)


@jax.jit
def mdfc3_pallas(x_nchw, slab):
    """x_nchw: (N, Ci, H, W) f32; slab: packed params from prepare_pallas_params."""
    N, ci, H, W = x_nchw.shape
    co = 2 * ci                 # MDFC_3's forward only type-checks for this
    HW = H * W
    crow_i, crow_o = _ceil8(ci), _ceil8(co)
    assert co == crow_o, "kernel assumes out_channels is a multiple of 8"
    assert HW % 128 == 0, "H*W must be a multiple of 128 for lane-dense blocks"
    assert LPAD >= 2 * (W + 1), "lane pad must cover the 5x5 conv shifts"

    offs, srows, swidth = slab_layout(ci, co)
    assert slab.shape == (srows, swidth)

    Nb = _pick_nb(N)
    G = N // Nb
    L = Nb * HW
    SEG = HW + 2 * LPAD
    prows = max(25 * crow_i, 9 * crow_o)

    # NCHW -> (channels, N*H*W): channels on sublanes (zero-padded to a
    # multiple of 8 so every in-kernel tap store is a full aligned 8-sublane
    # store), images concatenated along the lane axis.  Pure layout plumbing.
    xr = x_nchw.reshape(N, ci, HW).transpose(1, 0, 2).reshape(ci, N * HW)
    xr = jnp.pad(xr, ((0, crow_i - ci), (0, 0)))

    kernel = functools.partial(_mdfc3_kernel, offs, ci, co, H, W, Nb)
    out = pl.pallas_call(
        kernel,
        out_shape=jax.ShapeDtypeStruct((co, N * HW), x_nchw.dtype),
        grid_spec=pltpu.PrefetchScalarGridSpec(
            num_scalar_prefetch=0,
            grid=(G,),
            in_specs=[
                pl.BlockSpec((crow_i, L), lambda n: (0, n)),      # x slab
                pl.BlockSpec((srows, swidth), lambda n: (0, 0)),  # weights (resident)
            ],
            out_specs=pl.BlockSpec((co, L), lambda n: (0, n)),
            scratch_shapes=[
                pltpu.VMEM((crow_i, Nb * SEG), jnp.float32),   # padded x rows
                pltpu.VMEM((crow_o, Nb * SEG), jnp.float32),   # padded h rows
                pltpu.VMEM((prows, HW), jnp.float32),          # shared im2col patch
            ],
        ),
        compiler_params=pltpu.CompilerParams(
            dimension_semantics=("parallel",)),
    )(xr, slab)
    return out.reshape(co, N, H, W).transpose(1, 0, 2, 3)


# ----------------------------------------------------------------------------
# One-time parameter packing: BN scale folded into conv weights, cat((g,g))
# folded into channel_tran_2, biases as (C,1) columns, everything placed into
# one lane-dense f32 slab (single DMA at runtime).
# ----------------------------------------------------------------------------
def prepare_pallas_params(p, ci, co):
    assert co == 2 * ci, "MDFC_3 forward requires out_channels == 2*in_channels"
    crow_i, crow_o = _ceil8(ci), _ceil8(co)

    def conv_w(w_hwio, scale, crow):
        K, _, cin, cout = w_hwio.shape
        w = w_hwio * scale[None, None, None, :]                # fold BN scale
        w = jnp.transpose(w, (3, 0, 1, 2)).reshape(cout, K * K, cin)
        if crow > cin:                                         # zero cols for pad chans
            w = jnp.pad(w, ((0, 0), (0, 0), (0, crow - cin)))
        return w.reshape(cout, K * K * crow)

    def mat(w_1x1):                 # (1,1,Cin,Cout) HWIO -> (Cout, Cin)
        return w_1x1[0, 0].T

    def colv(b):                    # (C,) -> (C,1) lane-broadcast column
        return b.reshape(-1, 1)

    ct2_full = p['ct2_w'][0, 0]     # (4*ci, ci)
    parts = {
        'w1': conv_w(p['b1_w1'], p['b1_s1'], crow_i), 'bb1': colv(p['b1_sh1']),
        'w2': conv_w(p['b1_w2'], p['b1_s2'], crow_o), 'bb2': colv(p['b1_sh2']),
        'w5': conv_w(p['b2_w'], p['b2_s'], crow_i), 'bb5': colv(p['b2_sh']),
        'ct1_w': mat(p['ct1_w']), 'ct1_b': colv(p['ct1_b']),
        # torch.cat((g, g), dim=1) folded: W[:, :2ci] + W[:, 2ci:]
        'ct2_w': (ct2_full[:2 * ci] + ct2_full[2 * ci:]).T, 'ct2_b': colv(p['ct2_b']),
        'b3_w': mat(p['b3_w']), 'b3_b': colv(p['b3_b']),
        'ct3_w': mat(p['ct3_w']), 'ct3_b': colv(p['ct3_b']),
        'ct4_w': mat(p['ct4_w']), 'ct4_b': colv(p['ct4_b']),
    }
    offs, rows, width = slab_layout(ci, co)
    slab = jnp.zeros((rows, width), jnp.float32)
    for name, (off, r, w) in offs.items():
        a = parts[name].astype(jnp.float32)
        assert a.shape == (r, w), (name, a.shape, (r, w))
        slab = slab.at[0:r, off:off + w].set(a)
    return slab


# ----------------------------------------------------------------------------
# Pure-JAX reference (mirrors the PyTorch module structure, NHWC convs)
# ----------------------------------------------------------------------------
def conv_ref(x, w, scale, shift, *, relu=False, residual=None):
    y = lax.conv_general_dilated(
        x, w, window_strides=(1, 1), padding='SAME',
        dimension_numbers=('NHWC', 'HWIO', 'NHWC'))
    y = y * scale + shift
    if residual is not None:
        y = y + residual
    if relu:
        y = jnp.maximum(y, 0.0)
    return y


def mdfc3_forward_ref(x, p):
    ci = x.shape[-1]
    co = p['ct4_w'].shape[-1]
    ones_ci = jnp.ones((ci,), jnp.float32)
    ones_co = jnp.ones((co,), jnp.float32)

    h = conv_ref(x, p['b1_w1'], p['b1_s1'], p['b1_sh1'], relu=True)
    h = conv_ref(h, p['b1_w2'], p['b1_s2'], p['b1_sh2'], relu=True)
    b1 = conv_ref(h, p['ct1_w'], ones_ci, p['ct1_b'], relu=True, residual=x)

    g = conv_ref(x, p['b2_w'], p['b2_s'], p['b2_sh'], relu=True)
    b2 = conv_ref(jnp.concatenate([g, g], axis=-1), p['ct2_w'], ones_ci,
                  p['ct2_b'], relu=True, residual=x)

    b3 = conv_ref(x, p['b3_w'], ones_ci, p['b3_b'])

    bc = conv_ref(jnp.concatenate([b1, b2, b3], axis=-1), p['ct3_w'], ones_ci,
                  p['ct3_b'], relu=True, residual=x)
    return conv_ref(bc, p['ct4_w'], ones_co, p['ct4_b'])


# ----------------------------------------------------------------------------
# Deterministic parameter init (BatchNorm folded to inference-mode affine)
# ----------------------------------------------------------------------------
def _bn_fold(gamma, beta, mean, var, eps=1e-5):
    s = gamma / jnp.sqrt(var + eps)
    return s, beta - mean * s


def init_params(key, ci, co):
    keys = iter(jax.random.split(key, 32))

    def nrm(shape, s=0.1):
        return s * jax.random.normal(next(keys), shape, jnp.float32)

    def bn(c):
        gamma = 1.0 + nrm((c,))
        beta = nrm((c,))
        mean = nrm((c,))
        var = 1.0 + jnp.abs(nrm((c,), 0.5))
        return _bn_fold(gamma, beta, mean, var)

    # TODO(synk): PyTorch BatchNorm2d in train mode uses batch statistics;
    # here BN is implemented in inference mode with folded running stats.
    p = {}
    p['b1_w1'] = nrm((3, 3, ci, co))
    p['b1_s1'], p['b1_sh1'] = bn(co)
    p['b1_w2'] = nrm((3, 3, co, co))
    p['b1_s2'], p['b1_sh2'] = bn(co)
    p['b2_w'] = nrm((5, 5, ci, co))
    p['b2_s'], p['b2_sh'] = bn(co)
    p['b3_w'] = nrm((1, 1, ci, ci))
    p['b3_b'] = nrm((ci,))
    p['ct1_w'] = nrm((1, 1, 2 * ci, ci))
    p['ct1_b'] = nrm((ci,))
    p['ct2_w'] = nrm((1, 1, 4 * ci, ci))
    p['ct2_b'] = nrm((ci,))
    p['ct3_w'] = nrm((1, 1, 3 * ci, ci))
    p['ct3_b'] = nrm((ci,))
    p['ct4_w'] = nrm((1, 1, ci, co))
    p['ct4_b'] = nrm((co,))
    return p


if __name__ == "__main__":
    N, Ci, H, W = 2, 4, 16, 16
    Co = 2 * Ci  # required: out_channels == 2 * in_channels

    key = jax.random.PRNGKey(0)
    kparam, kx = jax.random.split(key)
    params = init_params(kparam, Ci, Co)
    slab = prepare_pallas_params(params, Ci, Co)

    x_nchw = jax.random.normal(kx, (N, Ci, H, W), jnp.float32)

    out_nchw = jax.block_until_ready(mdfc3_pallas(x_nchw, slab))

    x_nhwc = jnp.transpose(x_nchw, (0, 2, 3, 1))
    ref_nchw = jnp.transpose(mdfc3_forward_ref(x_nhwc, params), (0, 3, 1, 2))

    assert out_nchw.shape == (N, Co, H, W)
    max_err = float(jnp.max(jnp.abs(out_nchw - ref_nchw)))
    if max_err < 1e-3:
        print("KERNEL_OK")
    else:
        print(f"MISMATCH max_abs_err={max_err}")
</pallas_src>

<mosaic_0001>
module attributes {stable_mosaic.version = 11 : i64} {
  func.func @_mdfc3_kernel(%arg0: i32, %arg1: memref<8x256xf32, #tpu.memory_space<vmem>>, %arg2: memref<8x512xf32, #tpu.memory_space<vmem>>, %arg3: memref<8x256xf32, #tpu.memory_space<vmem>>, %arg4: memref<8x512xf32, #tpu.memory_space<vmem>>, %arg5: memref<8x512xf32, #tpu.memory_space<vmem>>, %arg6: memref<200x256xf32, #tpu.memory_space<vmem>>) attributes {dimension_semantics = [#tpu.dimension_semantics<parallel>], iteration_bounds = array<i64: 2>, scalar_prefetch = 0 : i64, scratch_operands = 3 : i64, tpu.core_type = #tpu.core_type<tc>, window_params = [{transform_indices = @transform_0, window_bounds = array<i64: 8, 256>}, {pipeline_mode = #tpu.pipeline_mode<synchronous>, transform_indices = @transform_1, window_bounds = array<i64: 8, 512>}, {transform_indices = @transform_2, window_bounds = array<i64: 8, 256>}]} {
    %cst = arith.constant 0.000000e+00 : f32
    %0 = vector.broadcast %cst : f32 to vector<8x128xf32>
    %cst_0 = arith.constant 0.000000e+00 : f32
    %1 = vector.broadcast %cst_0 : f32 to vector<8x128xf32>
    %c0 = arith.constant 0 : index
    %c0_1 = arith.constant 0 : index
    %2 = vector.load %arg4[%c0, %c0_1] : memref<8x512xf32, #tpu.memory_space<vmem>>, vector<8x128xf32>
    tpu.vector_store %arg4[%c0, %c0_1], %0 {strides = array<i32>} : memref<8x512xf32, #tpu.memory_space<vmem>>, vector<8x128xf32>,
    %c0_2 = arith.constant 0 : index
    %c384 = arith.constant 384 : index
    %3 = vector.load %arg4[%c0_2, %c384] : memref<8x512xf32, #tpu.memory_space<vmem>>, vector<8x128xf32>
    tpu.vector_store %arg4[%c0_2, %c384], %0 {strides = array<i32>} : memref<8x512xf32, #tpu.memory_space<vmem>>, vector<8x128xf32>,
    %c0_3 = arith.constant 0 : index
    %c0_4 = arith.constant 0 : index
    %4 = vector.load %arg5[%c0_3, %c0_4] : memref<8x512xf32, #tpu.memory_space<vmem>>, vector<8x128xf32>
    tpu.vector_store %arg5[%c0_3, %c0_4], %1 {strides = array<i32>} : memref<8x512xf32, #tpu.memory_space<vmem>>, vector<8x128xf32>,
    %c0_5 = arith.constant 0 : index
    %c384_6 = arith.constant 384 : index
    %5 = vector.load %arg5[%c0_5, %c384_6] : memref<8x512xf32, #tpu.memory_space<vmem>>, vector<8x128xf32>
    tpu.vector_store %arg5[%c0_5, %c384_6], %1 {strides = array<i32>} : memref<8x512xf32, #tpu.memory_space<vmem>>, vector<8x128xf32>,
    %6 = tpu.iota {dimensions = array<i32: 1>} : vector<1x256xi32>
    %c16_i32 = arith.constant 16 : i32
    %c0_i32 = arith.constant 0 : i32
    %7 = arith.cmpi eq, %c16_i32, %c0_i32 : i32
    %c1_i32 = arith.constant 1 : i32
    %8 = arith.select %7, %c1_i32, %c16_i32 : i32
    %9 = vector.broadcast %8 : i32 to vector<1x256xi32>
    %10 = arith.remsi %6, %9 : vector<1x256xi32>
    %c0_i32_7 = arith.constant 0 : i32
    %11 = vector.broadcast %c0_i32_7 : i32 to vector<1x256xi32>
    %12 = arith.cmpi ne, %10, %11 : vector<1x256xi32>
    %c0_i32_8 = arith.constant 0 : i32
    %13 = vector.broadcast %c0_i32_8 : i32 to vector<1x256xi32>
    %14 = arith.cmpi slt, %10, %13 : vector<1x256xi32>
    %c0_i32_9 = arith.constant 0 : i32
    %15 = arith.cmpi slt, %8, %c0_i32_9 : i32
    %16 = vector.broadcast %15 : i1 to vector<1x256xi1>
    %17 = vector.broadcast %16 : vector<1x256xi1> to vector<1x256xi1>
    %18 = arith.xori %14, %17 : vector<1x256xi1>
    %19 = arith.andi %18, %12 : vector<1x256xi1>
    %20 = vector.broadcast %8 : i32 to vector<1x256xi32>
    %21 = arith.addi %10, %20 : vector<1x256xi32>
    %22 = arith.select %19, %21, %10 : vector<1x256xi1>, vector<1x256xi32>
    %c2_i32 = arith.constant 2 : i32
    %23 = vector.broadcast %c2_i32 : i32 to vector<1x256xi32>
    %24 = arith.cmpi sge, %22, %23 : vector<1x256xi32>
    %c1_i32_10 = arith.constant 1 : i32
    %25 = vector.broadcast %c1_i32_10 : i32 to vector<1x256xi32>
    %26 = arith.cmpi sge, %22, %25 : vector<1x256xi32>
    %c15_i32 = arith.constant 15 : i32
    %27 = vector.broadcast %c15_i32 : i32 to vector<1x256xi32>
    %28 = arith.cmpi slt, %22, %27 : vector<1x256xi32>
    %c14_i32 = arith.constant 14 : i32
    %29 = vector.broadcast %c14_i32 : i32 to vector<1x256xi32>
    %30 = arith.cmpi slt, %22, %29 : vector<1x256xi32>
    %c0_11 = arith.constant 0 : index
    %c0_12 = arith.constant 0 : index
    %31 = vector.load %arg1[%c0_11, %c0_12] : memref<8x256xf32, #tpu.memory_space<vmem>>, vector<8x256xf32>
    %32 = vector.extract_strided_slice %31 {offsets = [0, 0], sizes = [4, 256], strides = [1, 1]} : vector<8x256xf32> to vector<4x256xf32>
    %c0_13 = arith.constant 0 : index
    %c128 = arith.constant 128 : index
    %33 = vector.load %arg4[%c0_13, %c128] : memref<8x512xf32, #tpu.memory_space<vmem>>, vector<8x256xf32>
    tpu.vector_store %arg4[%c0_13, %c128], %31 {strides = array<i32>} : memref<8x512xf32, #tpu.memory_space<vmem>>, vector<8x256xf32>,
    %c0_14 = arith.constant 0 : index
    %c0_15 = arith.constant 0 : index
    %34 = vector.load %arg2[%c0_14, %c0_15] : memref<8x512xf32, #tpu.memory_space<vmem>>, vector<8x72xf32>
    %c0_16 = arith.constant 0 : index
    %c111 = arith.constant 111 : index
    %35 = vector.load %arg4[%c0_16, %c111] : memref<8x512xf32, #tpu.memory_space<vmem>>, vector<8x256xf32>
    %cst_17 = arith.constant 0.000000e+00 : f32
    %36 = vector.shape_cast %26 : vector<1x256xi1> to vector<1x256xi1>
    %37 = vector.broadcast %36 : vector<1x256xi1> to vector<8x256xi1>
    %38 = vector.broadcast %cst_17 : f32 to vector<8x256xf32>
    %39 = arith.select %37, %35, %38 : vector<8x256xi1>, vector<8x256xf32>
    %c0_18 = arith.constant 0 : index
    %c0_19 = arith.constant 0 : index
    %40 = vector.load %arg6[%c0_18, %c0_19] : memref<200x256xf32, #tpu.memory_space<vmem>>, vector<8x256xf32>
    tpu.vector_store %arg6[%c0_18, %c0_19], %39 {strides = array<i32>} : memref<200x256xf32, #tpu.memory_space<vmem>>, vector<8x256xf32>,
    %c0_20 = arith.constant 0 : index
    %c112 = arith.constant 112 : index
    %41 = vector.load %arg4[%c0_20, %c112] : memref<8x512xf32, #tpu.memory_space<vmem>>, vector<8x256xf32>
    %c8 = arith.constant 8 : index
    %c0_21 = arith.constant 0 : index
    %42 = vector.load %arg6[%c8, %c0_21] : memref<200x256xf32, #tpu.memory_space<vmem>>, vector<8x256xf32>
    tpu.vector_store %arg6[%c8, %c0_21], %41 {strides = array<i32>} : memref<200x256xf32, #tpu.memory_space<vmem>>, vector<8x256xf32>,
    %c0_22 = arith.constant 0 : index
    %c113 = arith.constant 113 : index
    %43 = vector.load %arg4[%c0_22, %c113] : memref<8x512xf32, #tpu.memory_space<vmem>>, vector<8x256xf32>
    %cst_23 = arith.constant 0.000000e+00 : f32
    %44 = vector.shape_cast %28 : vector<1x256xi1> to vector<1x256xi1>
    %45 = vector.broadcast %44 : vector<1x256xi1> to vector<8x256xi1>
    %46 = vector.broadcast %cst_23 : f32 to vector<8x256xf32>
    %47 = arith.select %45, %43, %46 : vector<8x256xi1>, vector<8x256xf32>
    %c16 = arith.constant 16 : index
    %c0_24 = arith.constant 0 : index
    %48 = vector.load %arg6[%c16, %c0_24] : memref<200x256xf32, #tpu.memory_space<vmem>>, vector<8x256xf32>
    tpu.vector_store %arg6[%c16, %c0_24], %47 {strides = array<i32>} : memref<200x256xf32, #tpu.memory_space<vmem>>, vector<8x256xf32>,
    %c0_25 = arith.constant 0 : index
    %c127 = arith.constant 127 : index
    %49 = vector.load %arg4[%c0_25, %c127] : memref<8x512xf32, #tpu.memory_space<vmem>>, vector<8x256xf32>
    %cst_26 = arith.constant 0.000000e+00 : f32
    %50 = vector.shape_cast %26 : vector<1x256xi1> to vector<1x256xi1>
    %51 = vector.broadcast %50 : vector<1x256xi1> to vector<8x256xi1>
    %52 = vector.broadcast %cst_26 : f32 to vector<8x256xf32>
    %53 = arith.select %51, %49, %52 : vector<8x256xi1>, vector<8x256xf32>
    %c24 = arith.constant 24 : index
    %c0_27 = arith.constant 0 : index
    %54 = vector.load %arg6[%c24, %c0_27] : memref<200x256xf32, #tpu.memory_space<vmem>>, vector<8x256xf32>
    tpu.vector_store %arg6[%c24, %c0_27], %53 {strides = array<i32>} : memref<200x256xf32, #tpu.memory_space<vmem>>, vector<8x256xf32>,
    %c0_28 = arith.constant 0 : index
    %c128_29 = arith.constant 128 : index
    %55 = vector.load %arg4[%c0_28, %c128_29] : memref<8x512xf32, #tpu.memory_space<vmem>>, vector<8x256xf32>
    %c32 = arith.constant 32 : index
    %c0_30 = arith.constant 0 : index
    %56 = vector.load %arg6[%c32, %c0_30] : memref<200x256xf32, #tpu.memory_space<vmem>>, vector<8x256xf32>
    tpu.vector_store %arg6[%c32, %c0_30], %55 {strides = array<i32>} : memref<200x256xf32, #tpu.memory_space<vmem>>, vector<8x256xf32>,
    %c0_31 = arith.constant 0 : index
    %c129 = arith.constant 129 : index
    %57 = vector.load %arg4[%c0_31, %c129] : memref<8x512xf32, #tpu.memory_space<vmem>>, vector<8x256xf32>
    %cst_32 = arith.constant 0.000000e+00 : f32
    %58 = vector.shape_cast %28 : vector<1x256xi1> to vector<1x256xi1>
    %59 = vector.broadcast %58 : vector<1x256xi1> to vector<8x256xi1>
    %60 = vector.broadcast %cst_32 : f32 to vector<8x256xf32>
    %61 = arith.select %59, %57, %60 : vector<8x256xi1>, vector<8x256xf32>
    %c40 = arith.constant 40 : index
    %c0_33 = arith.constant 0 : index
    %62 = vector.load %arg6[%c40, %c0_33] : memref<200x256xf32, #tpu.memory_space<vmem>>, vector<8x256xf32>
    tpu.vector_store %arg6[%c40, %c0_33], %61 {strides = array<i32>} : memref<200x256xf32, #tpu.memory_space<vmem>>, vector<8x256xf32>,
    %c0_34 = arith.constant 0 : index
    %c143 = arith.constant 143 : index
    %63 = vector.load %arg4[%c0_34, %c143] : memref<8x512xf32, #tpu.memory_space<vmem>>, vector<8x256xf32>
    %cst_35 = arith.constant 0.000000e+00 : f32
    %64 = vector.shape_cast %26 : vector<1x256xi1> to vector<1x256xi1>
    %65 = vector.broadcast %64 : vector<1x256xi1> to vector<8x256xi1>
    %66 = vector.broadcast %cst_35 : f32 to vector<8x256xf32>
    %67 = arith.select %65, %63, %66 : vector<8x256xi1>, vector<8x256xf32>
    %c48 = arith.constant 48 : index
    %c0_36 = arith.constant 0 : index
    %68 = vector.load %arg6[%c48, %c0_36] : memref<200x256xf32, #tpu.memory_space<vmem>>, vector<8x256xf32>
    tpu.vector_store %arg6[%c48, %c0_36], %67 {strides = array<i32>} : memref<200x256xf32, #tpu.memory_space<vmem>>, vector<8x256xf32>,
    %c0_37 = arith.constant 0 : index
    %c144 = arith.constant 144 : index
    %69 = vector.load %arg4[%c0_37, %c144] : memref<8x512xf32, #tpu.memory_space<vmem>>, vector<8x256xf32>
    %c56 = arith.constant 56 : index
    %c0_38 = arith.constant 0 : index
    %70 = vector.load %arg6[%c56, %c0_38] : memref<200x256xf32, #tpu.memory_space<vmem>>, vector<8x256xf32>
    tpu.vector_store %arg6[%c56, %c0_38], %69 {strides = array<i32>} : memref<200x256xf32, #tpu.memory_space<vmem>>, vector<8x256xf32>,
    %c0_39 = arith.constant 0 : index
    %c145 = arith.constant 145 : index
    %71 = vector.load %arg4[%c0_39, %c145] : memref<8x512xf32, #tpu.memory_space<vmem>>, vector<8x256xf32>
    %cst_40 = arith.constant 0.000000e+00 : f32
    %72 = vector.shape_cast %28 : vector<1x256xi1> to vector<1x256xi1>
    %73 = vector.broadcast %72 : vector<1x256xi1> to vector<8x256xi1>
    %74 = vector.broadcast %cst_40 : f32 to vector<8x256xf32>
    %75 = arith.select %73, %71, %74 : vector<8x256xi1>, vector<8x256xf32>
    %c64 = arith.constant 64 : index
    %c0_41 = arith.constant 0 : index
    %76 = vector.load %arg6[%c64, %c0_41] : memref<200x256xf32, #tpu.memory_space<vmem>>, vector<8x256xf32>
    tpu.vector_store %arg6[%c64, %c0_41], %75 {strides = array<i32>} : memref<200x256xf32, #tpu.memory_space<vmem>>, vector<8x256xf32>,
    %c0_42 = arith.constant 0 : index
    %c0_43 = arith.constant 0 : index
    %77 = vector.load %arg6[%c0_42, %c0_43] : memref<200x256xf32, #tpu.memory_space<vmem>>, vector<72x256xf32>
    %cst_44 = arith.constant dense<0.000000e+00> : vector<8x256xf32>
    %78 = tpu.matmul %34, %77, %cst_44 {dimension_numbers = #tpu.dot_dimension_numbers<[1], [0], [0], [1], [0, 0, 1, 1], [], []>} : vector<8x72xf32>, vector<72x256xf32>, vector<8x256xf32> -> vector<8x256xf32>
    %c0_45 = arith.constant 0 : index
    %c72 = arith.constant 72 : index
    %79 = vector.load %arg2[%c0_45, %c72] : memref<8x512xf32, #tpu.memory_space<vmem>>, vector<8x1xf32>
    %80 = vector.broadcast %79 : vector<8x1xf32> to vector<8x256xf32>
    %81 = arith.addf %78, %80 : vector<8x256xf32>
    %cst_46 = arith.constant 0.000000e+00 : f32
    %82 = vector.broadcast %cst_46 : f32 to vector<8x256xf32>
    %83 = arith.maximumf %81, %82 : vector<8x256xf32>
    %c0_47 = arith.constant 0 : index
    %c146 = arith.constant 146 : index
    %84 = vector.load %arg2[%c0_47, %c146] : memref<8x512xf32, #tpu.memory_space<vmem>>, vector<8x200xf32>
    %c0_48 = arith.constant 0 : index
    %c94 = arith.constant 94 : index
    %85 = vector.load %arg4[%c0_48, %c94] : memref<8x512xf32, #tpu.memory_space<vmem>>, vector<8x256xf32>
    %cst_49 = arith.constant 0.000000e+00 : f32
    %86 = vector.shape_cast %24 : vector<1x256xi1> to vector<1x256xi1>
    %87 = vector.broadcast %86 : vector<1x256xi1> to vector<8x256xi1>
    %88 = vector.broadcast %cst_49 : f32 to vector<8x256xf32>
    %89 = arith.select %87, %85, %88 : vector<8x256xi1>, vector<8x256xf32>
    %c0_50 = arith.constant 0 : index
    %c0_51 = arith.constant 0 : index
    %90 = vector.load %arg6[%c0_50, %c0_51] : memref<200x256xf32, #tpu.memory_space<vmem>>, vector<8x256xf32>
    tpu.vector_store %arg6[%c0_50, %c0_51], %89 {strides = array<i32>} : memref<200x256xf32, #tpu.memory_space<vmem>>, vector<8x256xf32>,
    %c0_52 = arith.constant 0 : index
    %c95 = arith.constant 95 : index
    %91 = vector.load %arg4[%c0_52, %c95] : memref<8x512xf32, #tpu.memory_space<vmem>>, vector<8x256xf32>
    %cst_53 = arith.constant 0.000000e+00 : f32
    %92 = vector.shape_cast %26 : vector<1x256xi1> to vector<1x256xi1>
    %93 = vector.broadcast %92 : vector<1x256xi1> to vector<8x256xi1>
    %94 = vector.broadcast %cst_53 : f32 to vector<8x256xf32>
    %95 = arith.select %93, %91, %94 : vector<8x256xi1>, vector<8x256xf32>
    %c8_54 = arith.constant 8 : index
    %c0_55 = arith.constant 0 : index
    %96 = vector.load %arg6[%c8_54, %c0_55] : memref<200x256xf32, #tpu.memory_space<vmem>>, vector<8x256xf32>
    tpu.vector_store %arg6[%c8_54, %c0_55], %95 {strides = array<i32>} : memref<200x256xf32, #tpu.memory_space<vmem>>, vector<8x256xf32>,
    %c0_56 = arith.constant 0 : index
    %c96 = arith.constant 96 : index
    %97 = vector.load %arg4[%c0_56, %c96] : memref<8x512xf32, #tpu.memory_space<vmem>>, vector<8x256xf32>
    %c16_57 = arith.constant 16 : index
    %c0_58 = arith.constant 0 : index
    %98 = vector.load %arg6[%c16_57, %c0_58] : memref<200x256xf32, #tpu.memory_space<vmem>>, vector<8x256xf32>
    tpu.vector_store %arg6[%c16_57, %c0_58], %97 {strides = array<i32>} : memref<200x256xf32, #tpu.memory_space<vmem>>, vector<8x256xf32>,
    %c0_59 = arith.constant 0 : index
    %c97 = arith.constant 97 : index
    %99 = vector.load %arg4[%c0_59, %c97] : memref<8x512xf32, #tpu.memory_space<vmem>>, vector<8x256xf32>
    %cst_60 = arith.constant 0.000000e+00 : f32
    %100 = vector.shape_cast %28 : vector<1x256xi1> to vector<1x256xi1>
    %101 = vector.broadcast %100 : vector<1x256xi1> to vector<8x256xi1>
    %102 = vector.broadcast %cst_60 : f32 to vector<8x256xf32>
    %103 = arith.select %101, %99, %102 : vector<8x256xi1>, vector<8x256xf32>
    %c24_61 = arith.constant 24 : index
    %c0_62 = arith.constant 0 : index
    %104 = vector.load %arg6[%c24_61, %c0_62] : memref<200x256xf32, #tpu.memory_space<vmem>>, vector<8x256xf32>
    tpu.vector_store %arg6[%c24_61, %c0_62], %103 {strides = array<i32>} : memref<200x256xf32, #tpu.memory_space<vmem>>, vector<8x256xf32>,
    %c0_63 = arith.constant 0 : index
    %c98 = arith.constant 98 : index
    %105 = vector.load %arg4[%c0_63, %c98] : memref<8x512xf32, #tpu.memory_space<vmem>>, vector<8x256xf32>
    %cst_64 = arith.constant 0.000000e+00 : f32
    %106 = vector.shape_cast %30 : vector<1x256xi1> to vector<1x256xi1>
    %107 = vector.broadcast %106 : vector<1x256xi1> to vector<8x256xi1>
    %108 = vector.broadcast %cst_64 : f32 to vector<8x256xf32>
    %109 = arith.select %107, %105, %108 : vector<8x256xi1>, vector<8x256xf32>
    %c32_65 = arith.constant 32 : index
    %c0_66 = arith.constant 0 : index
    %110 = vector.load %arg6[%c32_65, %c0_66] : memref<200x256xf32, #tpu.memory_space<vmem>>, vector<8x256xf32>
    tpu.vector_store %arg6[%c32_65, %c0_66], %109 {strides = array<i32>} : memref<200x256xf32, #tpu.memory_space<vmem>>, vector<8x256xf32>,
    %c0_67 = arith.constant 0 : index
    %c110 = arith.constant 110 : index
    %111 = vector.load %arg4[%c0_67, %c110] : memref<8x512xf32, #tpu.memory_space<vmem>>, vector<8x256xf32>
    %cst_68 = arith.constant 0.000000e+00 : f32
    %112 = vector.shape_cast %24 : vector<1x256xi1> to vector<1x256xi1>
    %113 = vector.broadcast %112 : vector<1x256xi1> to vector<8x256xi1>
    %114 = vector.broadcast %cst_68 : f32 to vector<8x256xf32>
    %115 = arith.select %113, %111, %114 : vector<8x256xi1>, vector<8x256xf32>
    %c40_69 = arith.constant 40 : index
    %c0_70 = arith.constant 0 : index
    %116 = vector.load %arg6[%c40_69, %c0_70] : memref<200x256xf32, #tpu.memory_space<vmem>>, vector<8x256xf32>
    tpu.vector_store %arg6[%c40_69, %c0_70], %115 {strides = array<i32>} : memref<200x256xf32, #tpu.memory_space<vmem>>, vector<8x256xf32>,
    %c0_71 = arith.constant 0 : index
    %c111_72 = arith.constant 111 : index
    %117 = vector.load %arg4[%c0_71, %c111_72] : memref<8x512xf32, #tpu.memory_space<vmem>>, vector<8x256xf32>
    %cst_73 = arith.constant 0.000000e+00 : f32
    %118 = vector.shape_cast %26 : vector<1x256xi1> to vector<1x256xi1>
    %119 = vector.broadcast %118 : vector<1x256xi1> to vector<8x256xi1>
    %120 = vector.broadcast %cst_73 : f32 to vector<8x256xf32>
    %121 = arith.select %119, %117, %120 : vector<8x256xi1>, vector<8x256xf32>
    %c48_74 = arith.constant 48 : index
    %c0_75 = arith.constant 0 : index
    %122 = vector.load %arg6[%c48_74, %c0_75] : memref<200x256xf32, #tpu.memory_space<vmem>>, vector<8x256xf32>
    tpu.vector_store %arg6[%c48_74, %c0_75], %121 {strides = array<i32>} : memref<200x256xf32, #tpu.memory_space<vmem>>, vector<8x256xf32>,
    %c0_76 = arith.constant 0 : index
    %c112_77 = arith.constant 112 : index
    %123 = vector.load %arg4[%c0_76, %c112_77] : memref<8x512xf32, #tpu.memory_space<vmem>>, vector<8x256xf32>
    %c56_78 = arith.constant 56 : index
    %c0_79 = arith.constant 0 : index
    %124 = vector.load %arg6[%c56_78, %c0_79] : memref<200x256xf32, #tpu.memory_space<vmem>>, vector<8x256xf32>
    tpu.vector_store %arg6[%c56_78, %c0_79], %123 {strides = array<i32>} : memref<200x256xf32, #tpu.memory_space<vmem>>, vector<8x256xf32>,
    %c0_80 = arith.constant 0 : index
    %c113_81 = arith.constant 113 : index
    %125 = vector.load %arg4[%c0_80, %c113_81] : memref<8x512xf32, #tpu.memory_space<vmem>>, vector<8x256xf32>
    %cst_82 = arith.constant 0.000000e+00 : f32
    %126 = vector.shape_cast %28 : vector<1x256xi1> to vector<1x256xi1>
    %127 = vector.broadcast %126 : vector<1x256xi1> to vector<8x256xi1>
    %128 = vector.broadcast %cst_82 : f32 to vector<8x256xf32>
    %129 = arith.select %127, %125, %128 : vector<8x256xi1>, vector<8x256xf32>
    %c64_83 = arith.constant 64 : index
    %c0_84 = arith.constant 0 : index
    %130 = vector.load %arg6[%c64_83, %c0_84] : memref<200x256xf32, #tpu.memory_space<vmem>>, vector<8x256xf32>
    tpu.vector_store %arg6[%c64_83, %c0_84], %129 {strides = array<i32>} : memref<200x256xf32, #tpu.memory_space<vmem>>, vector<8x256xf32>,
    %c0_85 = arith.constant 0 : index
    %c114 = arith.constant 114 : index
    %131 = vector.load %arg4[%c0_85, %c114] : memref<8x512xf32, #tpu.memory_space<vmem>>, vector<8x256xf32>
    %cst_86 = arith.constant 0.000000e+00 : f32
    %132 = vector.shape_cast %30 : vector<1x256xi1> to vector<1x256xi1>
    %133 = vector.broadcast %132 : vector<1x256xi1> to vector<8x256xi1>
    %134 = vector.broadcast %cst_86 : f32 to vector<8x256xf32>
    %135 = arith.select %133, %131, %134 : vector<8x256xi1>, vector<8x256xf32>
    %c72_87 = arith.constant 72 : index
    %c0_88 = arith.constant 0 : index
    %136 = vector.load %arg6[%c72_87, %c0_88] : memref<200x256xf32, #tpu.memory_space<vmem>>, vector<8x256xf32>
    tpu.vector_store %arg6[%c72_87, %c0_88], %135 {strides = array<i32>} : memref<200x256xf32, #tpu.memory_space<vmem>>, vector<8x256xf32>,
    %c0_89 = arith.constant 0 : index
    %c126 = arith.constant 126 : index
    %137 = vector.load %arg4[%c0_89, %c126] : memref<8x512xf32, #tpu.memory_space<vmem>>, vector<8x256xf32>
    %cst_90 = arith.constant 0.000000e+00 : f32
    %138 = vector.shape_cast %24 : vector<1x256xi1> to vector<1x256xi1>
    %139 = vector.broadcast %138 : vector<1x256xi1> to vector<8x256xi1>
    %140 = vector.broadcast %cst_90 : f32 to vector<8x256xf32>
    %141 = arith.select %139, %137, %140 : vector<8x256xi1>, vector<8x256xf32>
    %c80 = arith.constant 80 : index
    %c0_91 = arith.constant 0 : index
    %142 = vector.load %arg6[%c80, %c0_91] : memref<200x256xf32, #tpu.memory_space<vmem>>, vector<8x256xf32>
    tpu.vector_store %arg6[%c80, %c0_91], %141 {strides = array<i32>} : memref<200x256xf32, #tpu.memory_space<vmem>>, vector<8x256xf32>,
    %c0_92 = arith.constant 0 : index
    %c127_93 = arith.constant 127 : index
    %143 = vector.load %arg4[%c0_92, %c127_93] : memref<8x512xf32, #tpu.memory_space<vmem>>, vector<8x256xf32>
    %cst_94 = arith.constant 0.000000e+00 : f32
    %144 = vector.shape_cast %26 : vector<1x256xi1> to vector<1x256xi1>
    %145 = vector.broadcast %144 : vector<1x256xi1> to vector<8x256xi1>
    %146 = vector.broadcast %cst_94 : f32 to vector<8x256xf32>
    %147 = arith.select %145, %143, %146 : vector<8x256xi1>, vector<8x256xf32>
    %c88 = arith.constant 88 : index
    %c0_95 = arith.constant 0 : index
    %148 = vector.load %arg6[%c88, %c0_95] : memref<200x256xf32, #tpu.memory_space<vmem>>, vector<8x256xf32>
    tpu.vector_store %arg6[%c88, %c0_95], %147 {strides = array<i32>} : memref<200x256xf32, #tpu.memory_space<vmem>>, vector<8x256xf32>,
    %c0_96 = arith.constant 0 : index
    %c128_97 = arith.constant 128 : index
    %149 = vector.load %arg4[%c0_96, %c128_97] : memref<8x512xf32, #tpu.memory_space<vmem>>, vector<8x256xf32>
    %c96_98 = arith.constant 96 : index
    %c0_99 = arith.constant 0 : index
    %150 = vector.load %arg6[%c96_98, %c0_99] : memref<200x256xf32, #tpu.memory_space<vmem>>, vector<8x256xf32>
    tpu.vector_store %arg6[%c96_98, %c0_99], %149 {strides = array<i32>} : memref<200x256xf32, #tpu.memory_space<vmem>>, vector<8x256xf32>,
    %c0_100 = arith.constant 0 : index
    %c129_101 = arith.constant 129 : index
    %151 = vector.load %arg4[%c0_100, %c129_101] : memref<8x512xf32, #tpu.memory_space<vmem>>, vector<8x256xf32>
    %cst_102 = arith.constant 0.000000e+00 : f32
    %152 = vector.shape_cast %28 : vector<1x256xi1> to vector<1x256xi1>
    %153 = vector.broadcast %152 : vector<1x256xi1> to vector<8x256xi1>
    %154 = vector.broadcast %cst_102 : f32 to vector<8x256xf32>
    %155 = arith.select %153, %151, %154 : vector<8x256xi1>, vector<8x256xf32>
    %c104 = arith.constant 104 : index
    %c0_103 = arith.constant 0 : index
    %156 = vector.load %arg6[%c104, %c0_103] : memref<200x256xf32, #tpu.memory_space<vmem>>, vector<8x256xf32>
    tpu.vector_store %arg6[%c104, %c0_103], %155 {strides = array<i32>} : memref<200x256xf32, #tpu.memory_space<vmem>>, vector<8x256xf32>,
    %c0_104 = arith.constant 0 : index
    %c130 = arith.constant 130 : index
    %157 = vector.load %arg4[%c0_104, %c130] : memref<8x512xf32, #tpu.memory_space<vmem>>, vector<8x256xf32>
    %cst_105 = arith.constant 0.000000e+00 : f32
    %158 = vector.shape_cast %30 : vector<1x256xi1> to vector<1x256xi1>
    %159 = vector.broadcast %158 : vector<1x256xi1> to vector<8x256xi1>
    %160 = vector.broadcast %cst_105 : f32 to vector<8x256xf32>
    %161 = arith.select %159, %157, %160 : vector<8x256xi1>, vector<8x256xf32>
    %c112_106 = arith.constant 112 : index
    %c0_107 = arith.constant 0 : index
    %162 = vector.load %arg6[%c112_106, %c0_107] : memref<200x256xf32, #tpu.memory_space<vmem>>, vector<8x256xf32>
    tpu.vector_store %arg6[%c112_106, %c0_107], %161 {strides = array<i32>} : memref<200x256xf32, #tpu.memory_space<vmem>>, vector<8x256xf32>,
    %c0_108 = arith.constant 0 : index
    %c142 = arith.constant 142 : index
    %163 = vector.load %arg4[%c0_108, %c142] : memref<8x512xf32, #tpu.memory_space<vmem>>, vector<8x256xf32>
    %cst_109 = arith.constant 0.000000e+00 : f32
    %164 = vector.shape_cast %24 : vector<1x256xi1> to vector<1x256xi1>
    %165 = vector.broadcast %164 : vector<1x256xi1> to vector<8x256xi1>
    %166 = vector.broadcast %cst_109 : f32 to vector<8x256xf32>
    %167 = arith.select %165, %163, %166 : vector<8x256xi1>, vector<8x256xf32>
    %c120 = arith.constant 120 : index
    %c0_110 = arith.constant 0 : index
    %168 = vector.load %arg6[%c120, %c0_110] : memref<200x256xf32, #tpu.memory_space<vmem>>, vector<8x256xf32>
    tpu.vector_store %arg6[%c120, %c0_110], %167 {strides = array<i32>} : memref<200x256xf32, #tpu.memory_space<vmem>>, vector<8x256xf32>,
    %c0_111 = arith.constant 0 : index
    %c143_112 = arith.constant 143 : index
    %169 = vector.load %arg4[%c0_111, %c143_112] : memref<8x512xf32, #tpu.memory_space<vmem>>, vector<8x256xf32>
    %cst_113 = arith.constant 0.000000e+00 : f32
    %170 = vector.shape_cast %26 : vector<1x256xi1> to vector<1x256xi1>
    %171 = vector.broadcast %170 : vector<1x256xi1> to vector<8x256xi1>
    %172 = vector.broadcast %cst_113 : f32 to vector<8x256xf32>
    %173 = arith.select %171, %169, %172 : vector<8x256xi1>, vector<8x256xf32>
    %c128_114 = arith.constant 128 : index
    %c0_115 = arith.constant 0 : index
    %174 = vector.load %arg6[%c128_114, %c0_115] : memref<200x256xf32, #tpu.memory_space<vmem>>, vector<8x256xf32>
    tpu.vector_store %arg6[%c128_114, %c0_115], %173 {strides = array<i32>} : memref<200x256xf32, #tpu.memory_space<vmem>>, vector<8x256xf32>,
    %c0_116 = arith.constant 0 : index
    %c144_117 = arith.constant 144 : index
    %175 = vector.load %arg4[%c0_116, %c144_117] : memref<8x512xf32, #tpu.memory_space<vmem>>, vector<8x256xf32>
    %c136 = arith.constant 136 : index
    %c0_118 = arith.constant 0 : index
    %176 = vector.load %arg6[%c136, %c0_118] : memref<200x256xf32, #tpu.memory_space<vmem>>, vector<8x256xf32>
    tpu.vector_store %arg6[%c136, %c0_118], %175 {strides = array<i32>} : memref<200x256xf32, #tpu.memory_space<vmem>>, vector<8x256xf32>,
    %c0_119 = arith.constant 0 : index
    %c145_120 = arith.constant 145 : index
    %177 = vector.load %arg4[%c0_119, %c145_120] : memref<8x512xf32, #tpu.memory_space<vmem>>, vector<8x256xf32>
    %cst_121 = arith.constant 0.000000e+00 : f32
    %178 = vector.shape_cast %28 : vector<1x256xi1> to vector<1x256xi1>
    %179 = vector.broadcast %178 : vector<1x256xi1> to vector<8x256xi1>
    %180 = vector.broadcast %cst_121 : f32 to vector<8x256xf32>
    %181 = arith.select %179, %177, %180 : vector<8x256xi1>, vector<8x256xf32>
    %c144_122 = arith.constant 144 : index
    %c0_123 = arith.constant 0 : index
    %182 = vector.load %arg6[%c144_122, %c0_123] : memref<200x256xf32, #tpu.memory_space<vmem>>, vector<8x256xf32>
    tpu.vector_store %arg6[%c144_122, %c0_123], %181 {strides = array<i32>} : memref<200x256xf32, #tpu.memory_space<vmem>>, vector<8x256xf32>,
    %c0_124 = arith.constant 0 : index
    %c146_125 = arith.constant 146 : index
    %183 = vector.load %arg4[%c0_124, %c146_125] : memref<8x512xf32, #tpu.memory_space<vmem>>, vector<8x256xf32>
    %cst_126 = arith.constant 0.000000e+00 : f32
    %184 = vector.shape_cast %30 : vector<1x256xi1> to vector<1x256xi1>
    %185 = vector.broadcast %184 : vector<1x256xi1> to vector<8x256xi1>
    %186 = vector.broadcast %cst_126 : f32 to vector<8x256xf32>
    %187 = arith.select %185, %183, %186 : vector<8x256xi1>, vector<8x256xf32>
    %c152 = arith.constant 152 : index
    %c0_127 = arith.constant 0 : index
    %188 = vector.load %arg6[%c152, %c0_127] : memref<200x256xf32, #tpu.memory_space<vmem>>, vector<8x256xf32>
    tpu.vector_store %arg6[%c152, %c0_127], %187 {strides = array<i32>} : memref<200x256xf32, #tpu.memory_space<vmem>>, vector<8x256xf32>,
    %c0_128 = arith.constant 0 : index
    %c158 = arith.constant 158 : index
    %189 = vector.load %arg4[%c0_128, %c158] : memref<8x512xf32, #tpu.memory_space<vmem>>, vector<8x256xf32>
    %cst_129 = arith.constant 0.000000e+00 : f32
    %190 = vector.shape_cast %24 : vector<1x256xi1> to vector<1x256xi1>
    %191 = vector.broadcast %190 : vector<1x256xi1> to vector<8x256xi1>
    %192 = vector.broadcast %cst_129 : f32 to vector<8x256xf32>
    %193 = arith.select %191, %189, %192 : vector<8x256xi1>, vector<8x256xf32>
    %c160 = arith.constant 160 : index
    %c0_130 = arith.constant 0 : index
    %194 = vector.load %arg6[%c160, %c0_130] : memref<200x256xf32, #tpu.memory_space<vmem>>, vector<8x256xf32>
    tpu.vector_store %arg6[%c160, %c0_130], %193 {strides = array<i32>} : memref<200x256xf32, #tpu.memory_space<vmem>>, vector<8x256xf32>,
    %c0_131 = arith.constant 0 : index
    %c159 = arith.constant 159 : index
    %195 = vector.load %arg4[%c0_131, %c159] : memref<8x512xf32, #tpu.memory_space<vmem>>, vector<8x256xf32>
    %cst_132 = arith.constant 0.000000e+00 : f32
    %196 = vector.shape_cast %26 : vector<1x256xi1> to vector<1x256xi1>
    %197 = vector.broadcast %196 : vector<1x256xi1> to vector<8x256xi1>
    %198 = vector.broadcast %cst_132 : f32 to vector<8x256xf32>
    %199 = arith.select %197, %195, %198 : vector<8x256xi1>, vector<8x256xf32>
    %c168 = arith.constant 168 : index
    %c0_133 = arith.constant 0 : index
    %200 = vector.load %arg6[%c168, %c0_133] : memref<200x256xf32, #tpu.memory_space<vmem>>, vector<8x256xf32>
    tpu.vector_store %arg6[%c168, %c0_133], %199 {strides = array<i32>} : memref<200x256xf32, #tpu.memory_space<vmem>>, vector<8x256xf32>,
    %c0_134 = arith.constant 0 : index
    %c160_135 = arith.constant 160 : index
    %201 = vector.load %arg4[%c0_134, %c160_135] : memref<8x512xf32, #tpu.memory_space<vmem>>, vector<8x256xf32>
    %c176 = arith.constant 176 : index
    %c0_136 = arith.constant 0 : index
    %202 = vector.load %arg6[%c176, %c0_136] : memref<200x256xf32, #tpu.memory_space<vmem>>, vector<8x256xf32>
    tpu.vector_store %arg6[%c176, %c0_136], %201 {strides = array<i32>} : memref<200x256xf32, #tpu.memory_space<vmem>>, vector<8x256xf32>,
    %c0_137 = arith.constant 0 : index
    %c161 = arith.constant 161 : index
    %203 = vector.load %arg4[%c0_137, %c161] : memref<8x512xf32, #tpu.memory_space<vmem>>, vector<8x256xf32>
    %cst_138 = arith.constant 0.000000e+00 : f32
    %204 = vector.shape_cast %28 : vector<1x256xi1> to vector<1x256xi1>
    %205 = vector.broadcast %204 : vector<1x256xi1> to vector<8x256xi1>
    %206 = vector.broadcast %cst_138 : f32 to vector<8x256xf32>
    %207 = arith.select %205, %203, %206 : vector<8x256xi1>, vector<8x256xf32>
    %c184 = arith.constant 184 : index
    %c0_139 = arith.constant 0 : index
    %208 = vector.load %arg6[%c184, %c0_139] : memref<200x256xf32, #tpu.memory_space<vmem>>, vector<8x256xf32>
    tpu.vector_store %arg6[%c184, %c0_139], %207 {strides = array<i32>} : memref<200x256xf32, #tpu.memory_space<vmem>>, vector<8x256xf32>,
    %c0_140 = arith.constant 0 : index
    %c162 = arith.constant 162 : index
    %209 = vector.load %arg4[%c0_140, %c162] : memref<8x512xf32, #tpu.memory_space<vmem>>, vector<8x256xf32>
    %cst_141 = arith.constant 0.000000e+00 : f32
    %210 = vector.shape_cast %30 : vector<1x256xi1> to vector<1x256xi1>
    %211 = vector.broadcast %210 : vector<1x256xi1> to vector<8x256xi1>
    %212 = vector.broadcast %cst_141 : f32 to vector<8x256xf32>
    %213 = arith.select %211, %209, %212 : vector<8x256xi1>, vector<8x256xf32>
    %c192 = arith.constant 192 : index
    %c0_142 = arith.constant 0 : index
    %214 = vector.load %arg6[%c192, %c0_142] : memref<200x256xf32, #tpu.memory_space<vmem>>, vector<8x256xf32>
    tpu.vector_store %arg6[%c192, %c0_142], %213 {strides = array<i32>} : memref<200x256xf32, #tpu.memory_space<vmem>>, vector<8x256xf32>,
    %c0_143 = arith.constant 0 : index
    %c0_144 = arith.constant 0 : index
    %215 = vector.load %arg6[%c0_143, %c0_144] : memref<200x256xf32, #tpu.memory_space<vmem>>, vector<200x256xf32>
    %cst_145 = arith.constant dense<0.000000e+00> : vector<8x256xf32>
    %216 = tpu.matmul %84, %215, %cst_145 {dimension_numbers = #tpu.dot_dimension_numbers<[1], [0], [0], [1], [0, 0, 1, 1], [], []>} : vector<8x200xf32>, vector<200x256xf32>, vector<8x256xf32> -> vector<8x256xf32>
    %c0_146 = arith.constant 0 : index
    %c346 = arith.constant 346 : index
    %217 = vector.load %arg2[%c0_146, %c346] : memref<8x512xf32, #tpu.memory_space<vmem>>, vector<8x1xf32>
    %218 = vector.broadcast %217 : vector<8x1xf32> to vector<8x256xf32>
    %219 = arith.addf %216, %218 : vector<8x256xf32>
    %cst_147 = arith.constant 0.000000e+00 : f32
    %220 = vector.broadcast %cst_147 : f32 to vector<8x256xf32>
    %221 = arith.maximumf %219, %220 : vector<8x256xf32>
    %c0_148 = arith.constant 0 : index
    %c128_149 = arith.constant 128 : index
    %222 = vector.load %arg5[%c0_148, %c128_149] : memref<8x512xf32, #tpu.memory_space<vmem>>, vector<8x256xf32>
    tpu.vector_store %arg5[%c0_148, %c128_149], %83 {strides = array<i32>} : memref<8x512xf32, #tpu.memory_space<vmem>>, vector<8x256xf32>,
    %c0_150 = arith.constant 0 : index
    %c73 = arith.constant 73 : index
    %223 = vector.load %arg2[%c0_150, %c73] : memref<8x512xf32, #tpu.memory_space<vmem>>, vector<8x72xf32>
    %c0_151 = arith.constant 0 : index
    %c111_152 = arith.constant 111 : index
    %224 = vector.load %arg5[%c0_151, %c111_152] : memref<8x512xf32, #tpu.memory_space<vmem>>, vector<8x256xf32>
    %cst_153 = arith.constant 0.000000e+00 : f32
    %225 = vector.shape_cast %26 : vector<1x256xi1> to vector<1x256xi1>
    %226 = vector.broadcast %225 : vector<1x256xi1> to vector<8x256xi1>
    %227 = vector.broadcast %cst_153 : f32 to vector<8x256xf32>
    %228 = arith.select %226, %224, %227 : vector<8x256xi1>, vector<8x256xf32>
    %c0_154 = arith.constant 0 : index
    %c0_155 = arith.constant 0 : index
    %229 = vector.load %arg6[%c0_154, %c0_155] : memref<200x256xf32, #tpu.memory_space<vmem>>, vector<8x256xf32>
    tpu.vector_store %arg6[%c0_154, %c0_155], %228 {strides = array<i32>} : memref<200x256xf32, #tpu.memory_space<vmem>>, vector<8x256xf32>,
    %c0_156 = arith.constant 0 : index
    %c112_157 = arith.constant 112 : index
    %230 = vector.load %arg5[%c0_156, %c112_157] : memref<8x512xf32, #tpu.memory_space<vmem>>, vector<8x256xf32>
    %c8_158 = arith.constant 8 : index
    %c0_159 = arith.constant 0 : index
    %231 = vector.load %arg6[%c8_158, %c0_159] : memref<200x256xf32, #tpu.memory_space<vmem>>, vector<8x256xf32>
    tpu.vector_store %arg6[%c8_158, %c0_159], %230 {strides = array<i32>} : memref<200x256xf32, #tpu.memory_space<vmem>>, vector<8x256xf32>,
    %c0_160 = arith.constant 0 : index
    %c113_161 = arith.constant 113 : index
    %232 = vector.load %arg5[%c0_160, %c113_161] : memref<8x512xf32, #tpu.memory_space<vmem>>, vector<8x256xf32>
    %cst_162 = arith.constant 0.000000e+00 : f32
    %233 = vector.shape_cast %28 : vector<1x256xi1> to vector<1x256xi1>
    %234 = vector.broadcast %233 : vector<1x256xi1> to vector<8x256xi1>
    %235 = vector.broadcast %cst_162 : f32 to vector<8x256xf32>
    %236 = arith.select %234, %232, %235 : vector<8x256xi1>, vector<8x256xf32>
    %c16_163 = arith.constant 16 : index
    %c0_164 = arith.constant 0 : index
    %237 = vector.load %arg6[%c16_163, %c0_164] : memref<200x256xf32, #tpu.memory_space<vmem>>, vector<8x256xf32>
    tpu.vector_store %arg6[%c16_163, %c0_164], %236 {strides = array<i32>} : memref<200x256xf32, #tpu.memory_space<vmem>>, vector<8x256xf32>,
    %c0_165 = arith.constant 0 : index
    %c127_166 = arith.constant 127 : index
    %238 = vector.load %arg5[%c0_165, %c127_166] : memref<8x512xf32, #tpu.memory_space<vmem>>, vector<8x256xf32>
    %cst_167 = arith.constant 0.000000e+00 : f32
    %239 = vector.shape_cast %26 : vector<1x256xi1> to vector<1x256xi1>
    %240 = vector.broadcast %239 : vector<1x256xi1> to vector<8x256xi1>
    %241 = vector.broadcast %cst_167 : f32 to vector<8x256xf32>
    %242 = arith.select %240, %238, %241 : vector<8x256xi1>, vector<8x256xf32>
    %c24_168 = arith.constant 24 : index
    %c0_169 = arith.constant 0 : index
    %243 = vector.load %arg6[%c24_168, %c0_169] : memref<200x256xf32, #tpu.memory_space<vmem>>, vector<8x256xf32>
    tpu.vector_store %arg6[%c24_168, %c0_169], %242 {strides = array<i32>} : memref<200x256xf32, #tpu.memory_space<vmem>>, vector<8x256xf32>,
    %c0_170 = arith.constant 0 : index
    %c128_171 = arith.constant 128 : index
    %244 = vector.load %arg5[%c0_170, %c128_171] : memref<8x512xf32, #tpu.memory_space<vmem>>, vector<8x256xf32>
    %c32_172 = arith.constant 32 : index
    %c0_173 = arith.constant 0 : index
    %245 = vector.load %arg6[%c32_172, %c0_173] : memref<200x256xf32, #tpu.memory_space<vmem>>, vector<8x256xf32>
    tpu.vector_store %arg6[%c32_172, %c0_173], %244 {strides = array<i32>} : memref<200x256xf32, #tpu.memory_space<vmem>>, vector<8x256xf32>,
    %c0_174 = arith.constant 0 : index
    %c129_175 = arith.constant 129 : index
    %246 = vector.load %arg5[%c0_174, %c129_175] : memref<8x512xf32, #tpu.memory_space<vmem>>, vector<8x256xf32>
    %cst_176 = arith.constant 0.000000e+00 : f32
    %247 = vector.shape_cast %28 : vector<1x256xi1> to vector<1x256xi1>
    %248 = vector.broadcast %247 : vector<1x256xi1> to vector<8x256xi1>
    %249 = vector.broadcast %cst_176 : f32 to vector<8x256xf32>
    %250 = arith.select %248, %246, %249 : vector<8x256xi1>, vector<8x256xf32>
    %c40_177 = arith.constant 40 : index
    %c0_178 = arith.constant 0 : index
    %251 = vector.load %arg6[%c40_177, %c0_178] : memref<200x256xf32, #tpu.memory_space<vmem>>, vector<8x256xf32>
    tpu.vector_store %arg6[%c40_177, %c0_178], %250 {strides = array<i32>} : memref<200x256xf32, #tpu.memory_space<vmem>>, vector<8x256xf32>,
    %c0_179 = arith.constant 0 : index
    %c143_180 = arith.constant 143 : index
    %252 = vector.load %arg5[%c0_179, %c143_180] : memref<8x512xf32, #tpu.memory_space<vmem>>, vector<8x256xf32>
    %cst_181 = arith.constant 0.000000e+00 : f32
    %253 = vector.shape_cast %26 : vector<1x256xi1> to vector<1x256xi1>
    %254 = vector.broadcast %253 : vector<1x256xi1> to vector<8x256xi1>
    %255 = vector.broadcast %cst_181 : f32 to vector<8x256xf32>
    %256 = arith.select %254, %252, %255 : vector<8x256xi1>, vector<8x256xf32>
    %c48_182 = arith.constant 48 : index
    %c0_183 = arith.constant 0 : index
    %257 = vector.load %arg6[%c48_182, %c0_183] : memref<200x256xf32, #tpu.memory_space<vmem>>, vector<8x256xf32>
    tpu.vector_store %arg6[%c48_182, %c0_183], %256 {strides = array<i32>} : memref<200x256xf32, #tpu.memory_space<vmem>>, vector<8x256xf32>,
    %c0_184 = arith.constant 0 : index
    %c144_185 = arith.constant 144 : index
    %258 = vector.load %arg5[%c0_184, %c144_185] : memref<8x512xf32, #tpu.memory_space<vmem>>, vector<8x256xf32>
    %c56_186 = arith.constant 56 : index
    %c0_187 = arith.constant 0 : index
    %259 = vector.load %arg6[%c56_186, %c0_187] : memref<200x256xf32, #tpu.memory_space<vmem>>, vector<8x256xf32>
    tpu.vector_store %arg6[%c56_186, %c0_187], %258 {strides = array<i32>} : memref<200x256xf32, #tpu.memory_space<vmem>>, vector<8x256xf32>,
    %c0_188 = arith.constant 0 : index
    %c145_189 = arith.constant 145 : index
    %260 = vector.load %arg5[%c0_188, %c145_189] : memref<8x512xf32, #tpu.memory_space<vmem>>, vector<8x256xf32>
    %cst_190 = arith.constant 0.000000e+00 : f32
    %261 = vector.shape_cast %28 : vector<1x256xi1> to vector<1x256xi1>
    %262 = vector.broadcast %261 : vector<1x256xi1> to vector<8x256xi1>
    %263 = vector.broadcast %cst_190 : f32 to vector<8x256xf32>
    %264 = arith.select %262, %260, %263 : vector<8x256xi1>, vector<8x256xf32>
    %c64_191 = arith.constant 64 : index
    %c0_192 = arith.constant 0 : index
    %265 = vector.load %arg6[%c64_191, %c0_192] : memref<200x256xf32, #tpu.memory_space<vmem>>, vector<8x256xf32>
    tpu.vector_store %arg6[%c64_191, %c0_192], %264 {strides = array<i32>} : memref<200x256xf32, #tpu.memory_space<vmem>>, vector<8x256xf32>,
    %c0_193 = arith.constant 0 : index
    %c0_194 = arith.constant 0 : index
    %266 = vector.load %arg6[%c0_193, %c0_194] : memref<200x256xf32, #tpu.memory_space<vmem>>, vector<72x256xf32>
    %cst_195 = arith.constant dense<0.000000e+00> : vector<8x256xf32>
    %267 = tpu.matmul %223, %266, %cst_195 {dimension_numbers = #tpu.dot_dimension_numbers<[1], [0], [0], [1], [0, 0, 1, 1], [], []>} : vector<8x72xf32>, vector<72x256xf32>, vector<8x256xf32> -> vector<8x256xf32>
    %c0_196 = arith.constant 0 : index
    %c145_197 = arith.constant 145 : index
    %268 = vector.load %arg2[%c0_196, %c145_197] : memref<8x512xf32, #tpu.memory_space<vmem>>, vector<8x1xf32>
    %269 = vector.broadcast %268 : vector<8x1xf32> to vector<8x256xf32>
    %270 = arith.addf %267, %269 : vector<8x256xf32>
    %cst_198 = arith.constant 0.000000e+00 : f32
    %271 = vector.broadcast %cst_198 : f32 to vector<8x256xf32>
    %272 = arith.maximumf %270, %271 : vector<8x256xf32>
    %c0_199 = arith.constant 0 : index
    %c347 = arith.constant 347 : index
    %273 = vector.load %arg2[%c0_199, %c347] : memref<8x512xf32, #tpu.memory_space<vmem>>, vector<4x8xf32>
    %cst_200 = arith.constant dense<0.000000e+00> : vector<4x256xf32>
    %274 = tpu.matmul %273, %272, %cst_200 {dimension_numbers = #tpu.dot_dimension_numbers<[1], [0], [0], [1], [0, 0, 1, 1], [], []>} : vector<4x8xf32>, vector<8x256xf32>, vector<4x256xf32> -> vector<4x256xf32>
    %275 = arith.addf %32, %274 : vector<4x256xf32>
    %c0_201 = arith.constant 0 : index
    %c355 = arith.constant 355 : index
    %276 = vector.load %arg2[%c0_201, %c355] : memref<8x512xf32, #tpu.memory_space<vmem>>, vector<4x1xf32>
    %277 = vector.broadcast %276 : vector<4x1xf32> to vector<4x256xf32>
    %278 = arith.addf %275, %277 : vector<4x256xf32>
    %cst_202 = arith.constant 0.000000e+00 : f32
    %279 = vector.broadcast %cst_202 : f32 to vector<4x256xf32>
    %280 = arith.maximumf %278, %279 : vector<4x256xf32>
    %c0_203 = arith.constant 0 : index
    %c356 = arith.constant 356 : index
    %281 = vector.load %arg2[%c0_203, %c356] : memref<8x512xf32, #tpu.memory_space<vmem>>, vector<4x8xf32>
    %cst_204 = arith.constant dense<0.000000e+00> : vector<4x256xf32>
    %282 = tpu.matmul %281, %221, %cst_204 {dimension_numbers = #tpu.dot_dimension_numbers<[1], [0], [0], [1], [0, 0, 1, 1], [], []>} : vector<4x8xf32>, vector<8x256xf32>, vector<4x256xf32> -> vector<4x256xf32>
    %283 = arith.addf %32, %282 : vector<4x256xf32>
    %c0_205 = arith.constant 0 : index
    %c364 = arith.constant 364 : index
    %284 = vector.load %arg2[%c0_205, %c364] : memref<8x512xf32, #tpu.memory_space<vmem>>, vector<4x1xf32>
    %285 = vector.broadcast %284 : vector<4x1xf32> to vector<4x256xf32>
    %286 = arith.addf %283, %285 : vector<4x256xf32>
    %cst_206 = arith.constant 0.000000e+00 : f32
    %287 = vector.broadcast %cst_206 : f32 to vector<4x256xf32>
    %288 = arith.maximumf %286, %287 : vector<4x256xf32>
    %c0_207 = arith.constant 0 : index
    %c365 = arith.constant 365 : index
    %289 = vector.load %arg2[%c0_207, %c365] : memref<8x512xf32, #tpu.memory_space<vmem>>, vector<4x4xf32>
    %cst_208 = arith.constant dense<0.000000e+00> : vector<4x256xf32>
    %290 = tpu.matmul %289, %32, %cst_208 {dimension_numbers = #tpu.dot_dimension_numbers<[1], [0], [0], [1], [0, 0, 1, 1], [], []>} : vector<4x4xf32>, vector<4x256xf32>, vector<4x256xf32> -> vector<4x256xf32>
    %c0_209 = arith.constant 0 : index
    %c369 = arith.constant 369 : index
    %291 = vector.load %arg2[%c0_209, %c369] : memref<8x512xf32, #tpu.memory_space<vmem>>, vector<4x1xf32>
    %292 = vector.broadcast %291 : vector<4x1xf32> to vector<4x256xf32>
    %293 = arith.addf %290, %292 : vector<4x256xf32>
    %c0_210 = arith.constant 0 : index
    %c370 = arith.constant 370 : index
    %294 = vector.load %arg2[%c0_210, %c370] : memref<8x512xf32, #tpu.memory_space<vmem>>, vector<4x12xf32>
    %295 = vector.extract_strided_slice %294 {offsets = [0, 0], sizes = [4, 4], strides = [1, 1]} : vector<4x12xf32> to vector<4x4xf32>
    %cst_211 = arith.constant dense<0.000000e+00> : vector<4x256xf32>
    %296 = tpu.matmul %295, %280, %cst_211 {dimension_numbers = #tpu.dot_dimension_numbers<[1], [0], [0], [1], [0, 0, 1, 1], [], []>} : vector<4x4xf32>, vector<4x256xf32>, vector<4x256xf32> -> vector<4x256xf32>
    %297 = vector.extract_strided_slice %294 {offsets = [0, 4], sizes = [4, 4], strides = [1, 1]} : vector<4x12xf32> to vector<4x4xf32>
    %cst_212 = arith.constant dense<0.000000e+00> : vector<4x256xf32>
    %298 = tpu.matmul %297, %288, %cst_212 {dimension_numbers = #tpu.dot_dimension_numbers<[1], [0], [0], [1], [0, 0, 1, 1], [], []>} : vector<4x4xf32>, vector<4x256xf32>, vector<4x256xf32> -> vector<4x256xf32>
    %299 = arith.addf %296, %298 : vector<4x256xf32>
    %300 = vector.extract_strided_slice %294 {offsets = [0, 8], sizes = [4, 4], strides = [1, 1]} : vector<4x12xf32> to vector<4x4xf32>
    %cst_213 = arith.constant dense<0.000000e+00> : vector<4x256xf32>
    %301 = tpu.matmul %300, %293, %cst_213 {dimension_numbers = #tpu.dot_dimension_numbers<[1], [0], [0], [1], [0, 0, 1, 1], [], []>} : vector<4x4xf32>, vector<4x256xf32>, vector<4x256xf32> -> vector<4x256xf32>
    %302 = arith.addf %299, %301 : vector<4x256xf32>
    %c0_214 = arith.constant 0 : index
    %c382 = arith.constant 382 : index
    %303 = vector.load %arg2[%c0_214, %c382] : memref<8x512xf32, #tpu.memory_space<vmem>>, vector<4x1xf32>
    %304 = vector.broadcast %303 : vector<4x1xf32> to vector<4x256xf32>
    %305 = arith.addf %302, %304 : vector<4x256xf32>
    %306 = arith.addf %32, %305 : vector<4x256xf32>
    %cst_215 = arith.constant 0.000000e+00 : f32
    %307 = vector.broadcast %cst_215 : f32 to vector<4x256xf32>
    %308 = arith.maximumf %306, %307 : vector<4x256xf32>
    %c0_216 = arith.constant 0 : index
    %c383 = arith.constant 383 : index
    %309 = vector.load %arg2[%c0_216, %c383] : memref<8x512xf32, #tpu.memory_space<vmem>>, vector<8x4xf32>
    %cst_217 = arith.constant dense<0.000000e+00> : vector<8x256xf32>
    %310 = tpu.matmul %309, %308, %cst_217 {dimension_numbers = #tpu.dot_dimension_numbers<[1], [0], [0], [1], [0, 0, 1, 1], [], []>} : vector<8x4xf32>, vector<4x256xf32>, vector<8x256xf32> -> vector<8x256xf32>
    %c0_218 = arith.constant 0 : index
    %c387 = arith.constant 387 : index
    %311 = vector.load %arg2[%c0_218, %c387] : memref<8x512xf32, #tpu.memory_space<vmem>>, vector<8x1xf32>
    %312 = vector.broadcast %311 : vector<8x1xf32> to vector<8x256xf32>
    %313 = arith.addf %310, %312 : vector<8x256xf32>
    %c0_219 = arith.constant 0 : index
    %c0_220 = arith.constant 0 : index
    %314 = vector.load %arg3[%c0_219, %c0_220] : memref<8x256xf32, #tpu.memory_space<vmem>>, vector<8x256xf32>
    tpu.vector_store %arg3[%c0_219, %c0_220], %313 {strides = array<i32>} : memref<8x256xf32, #tpu.memory_space<vmem>>, vector<8x256xf32>,
    return
  }
  func.func @transform_0(%arg0: i32) -> (i32, i32) {
    %c0_i32 = arith.constant 0 : i32
    %c0_i32_0 = arith.constant 0 : i32
    return %c0_i32, %arg0 : i32, i32
  }
  func.func @transform_1(%arg0: i32) -> (i32, i32) {
    %c0_i32 = arith.constant 0 : i32
    %c0_i32_0 = arith.constant 0 : i32
    %c0_i32_1 = arith.constant 0 : i32
    return %c0_i32, %c0_i32_0 : i32, i32
  }
  func.func @transform_2(%arg0: i32) -> (i32, i32) {
    %c0_i32 = arith.constant 0 : i32
    %c0_i32_0 = arith.constant 0 : i32
    return %c0_i32, %arg0 : i32, i32
  }
}

</mosaic_0001>

<bundles_post_ra>
// kernel: mdfc3_pallas.1
= control target key start
LH: loop header
LB: loop body
LE: loop exit
PB: predicated region body
PF: predicated region fallthrough
CT: control target
= control target key end

     0   :  { %s2600_s9 = smov 0   ;;  %s3259_s0 = inlined_call_operand.vmem [shape: f32[8,512], index: 0, kind: input, shape index: {}]   ;;  %s3260_s1 = inlined_call_operand.vmem [shape: f32[8,512], index: 1, kind: input, shape index: {}]   ;;  %s3261_s2 = inlined_call_operand.vmem [shape: f32[8,512], index: 2, kind: output, shape index: {}]  }
   0x1 LB: > { %s2045_s10 = sadd.s32 4294967295, %s2543_s9   ;;  %p2049_p0 = scmp.ge.s32.totalorder %s2543_s9, 1  ;;  %s2543_s9 = sphi %s2600_s9, %s12_s9  }
   0x2   : > { %p113_p1 = scmp.lt.s32.totalorder %s2543_s9, 3 }
   0x4   : > { %p114_p2 = pnand %p2049_p0, %p113_p1 }
   0x5   : > { %s2050_s11 = sshll.u32 (!%p114_p2), %s2045_s10, 1  ;;  %v2545_v0 = vmov (!%p114_p2), 0.0   ;;  %s2546_s12 = smov (!%p114_p2), 17   ;;  %v2554_v5 = vmov (!%p114_p2), 72   ;;  %v2658_v6 = vld [vmem:[%s3260_s1] sm:$0xff] (!%p114_p2)  ;;  %v2693_v7 = vld [vmem:[%s3260_s1 + $0x8] sm:$0xff] (!%p114_p2)  ;;  %v151_v9 = vlaneseq (!%p114_p2) }
   0x6   : > { %117 = sbr.rel (%p114_p2) target bundleno = 1441 (0x5a1), region = 28  ;;  %201 = vrot.lane.b32.xlu1 (!%p114_p2), %v2545_v0, %s2546_s12  ;;  %p136_p3 = scmp.lt.s32.totalorder (!%p114_p2), %s2050_s11, 3  ;;  %459 = vmatprep.mubr.f32.mxu0 (!%p114_p2), %v2545_v0  ;;  %vm3274_vm0 = vcmask (!%p114_p2), 138240   ;;  %vm3271_vm2 = vcmask (!%p114_p2), 130048   ;;  %vm3262_vm4 = vcmask (!%p114_p2), 7168   ;;  %vm2568_vm5 = vmmov (!%p114_p2), 1  }
   0x7   : > { %s2547_s14 = smov (!%p114_p2), 16   ;;  %s2548_s18 = smov (!%p114_p2), 1   ;;  %2347 = vset.pattern.permute.xlu1 (!%p114_p2), %v2554_v5  ;;  %v152_v11 = vand.u32 (!%p114_p2), 127, %v151_v9  ;;  %vm3263_vm7 = vcmask (!%p114_p2), 121856   ;;  %v3282_v41 = vmov (!%p114_p2), 0  ;;  %v3284_v45 = vmov (!%p114_p2), 0 }
   0x8   : > { %s2549_s19 = smov (!%p114_p2), 15   ;;  %s2550_s20 = smov (!%p114_p2), 127   ;;  %vm3268_vm13 = vcmask (!%p114_p2), 1039360   ;;  %vm3264_vm14 = vcmask (!%p114_p2), 916480   ;;  %v2578_v28 = vmov (!%p114_p2), 108  }
   0x9   : > { %s2551_s21 = smov (!%p114_p2), 112   ;;  %s2552_s22 = smov (!%p114_p2), 113   ;;  %v153_v13 = vadd.s32 (!%p114_p2), 128, %v152_v11  ;;  %v2715_v17 = vand.u32 (!%p114_p2), 15, %v152_v11 }
   0xa   : > { %222 = vrot.lane.b32.xlu1 (!%p114_p2), %v2545_v0, %s2547_s14  ;;  %s2553_s23 = smov (!%p114_p2), 111   ;;  %s2555_s26 = smov (!%p114_p2), 33  }
   0xb   : > { %s2556_s27 = smov (!%p114_p2), 34   ;;  %s2557_s28 = smov (!%p114_p2), 31   ;;  %v2713_v16 = vand.u32 (!%p114_p2), 15, %v153_v13  ;;  %vm180_vm3 = vcmp.ge.s32.totalorder (!%p114_p2), %v2715_v17, 1  ;;  %vm3269_vm10 = vcmp.lt.s32.totalorder (!%p114_p2), %v2715_v17, 15 }
   0xc   : > { %s2558_s29 = smov (!%p114_p2), 32   ;;  %s2559_s30 = smov (!%p114_p2), 18   ;;  %vm2733_vm8 = vmpackc.low (!%p114_p2), %vm2568_vm5, %vm180_vm3 }
   0xd   : > { %s3345_s11 = smov (!%p136_p3, %s2050_s11), 3  ;;  %s2560_s3 = smov 30   ;;  %vm181_vm1 = vcmp.ge.s32.totalorder %v2713_v16, 1  ;;  %vm3270_vm9 = vcmp.lt.s32.totalorder %v2713_v16, 15  ;;  %vm2759_vm12 = vmpackc.low %vm180_vm3, %vm3269_vm10 }
   0xe   : > { %s2051_s13 = sshll.u32 %s3345_s11, 3  ;;  %s2561_s4 = smov 14   ;;  %vm2724_vm6 = vmpackc.low %vm2568_vm5, %vm181_vm1  ;;  %v3285_v45 = vsel %vm2759_vm12, 4294967295, %v3284_v45 }
   0xf   : > { %s2621_s17 = scalar_lea.vmem %s3259_s0, %s2051_s13  ;;  %s2562_s5 = smov 2   ;;  %vm2750_vm11 = vmpackc.low %vm181_vm1, %vm3270_vm9 }
  0x10   : > { %v2624_v1 = vld [vmem:[%s2621_s17] sm:$0xff]  ;;  %v2627_v2 = vld [vmem:[%s2621_s17 + $0x8] sm:$0xff]  ;;  %s2563_s6 = smov 114   ;;  %s2564_s7 = smov 126   ;;  %v3283_v41 = vsel %vm2750_vm11, 4294967295, %v3282_v41  ;;  %vm2772_vm15 = vmpackc.low %vm3270_vm9, %vm2568_vm5 }
  0x11   : > { %v2312_v3 = vpack.i.bf16 %v2627_v2, %v2624_v1  ;;  %v2641_v4 = vpack.i.bf16 %v2545_v0, %v2627_v2  ;;  %s2565_s15 = smov 110   ;;  %v2443_v8 = vpack.i.bf16 %v2693_v7, %v2624_v1  ;;  %s2566_s16 = smov 97  }
  0x12   : > { %s2567_s24 = smov 98   ;;  %s2569_s25 = smov 95  }
  0x13   : > { %2313 = vrot.lane.b32.xlu0 %v2312_v3, %s2546_s12  ;;  %2328 = vrot.lane.b32.xlu1 %v2312_v3, %s2548_s18 }
  0x17   : > { %2318 = vrot.lane.b32.xlu0 %v2312_v3, %s2547_s14  ;;  %266 = vrot.lane.b32.xlu1 %v2545_v0, %s2548_s18 }
  0x1b   : > { %2323 = vrot.lane.b32.xlu0 %v2312_v3, %s2549_s19  ;;  %291 = vrot.lane.b32.xlu1 %v2624_v1, %s2550_s20 }
  0x1f   : > { %245 = vrot.lane.b32.xlu0 %v2545_v0, %s2549_s19  ;;  %2343 = vrot.lane.b32.xlu1 %v2641_v4, %s2551_s21 }
  0x23   : > { %2333 = vrot.lane.b32.xlu0 %v2641_v4, %s2550_s20  ;;  %333 = vrot.lane.b32.xlu1 %v2624_v1, %s2551_s21 }
  0x27   : > { %2338 = vrot.lane.b32.xlu0 %v2641_v4, %s2552_s22  ;;  %356 = vrot.lane.b32.xlu1 %v2545_v0, %s2553_s23 }
  0x2b   : > { %312 = vrot.lane.b32.xlu0 %v2624_v1, %s2552_s22  ;;  %388 = vperm.xlu1 %2347, %v2658_v6  }
  0x2f   : > { %354 = vrot.lane.b32.xlu0 %v2627_v2, %s2553_s23  ;;  %2354 = vrot.lane.b32.xlu1 %v2312_v3, %s2555_s26 }
  0x33   : > { %352 = vrot.lane.b32.xlu0 %v2624_v1, %s2553_s23  ;;  %501 = vrot.lane.b32.xlu1 %v2545_v0, %s2555_s26  ;;  %s2570_s26 = smov 96  }
  0x37   : > { %2349 = vrot.lane.b32.xlu0 %v2312_v3, %s2556_s27  ;;  %2364 = vrot.lane.b32.xlu1 %v2312_v3, %s2557_s28 }
  0x3b   : > { %480 = vrot.lane.b32.xlu0 %v2545_v0, %s2556_s27  ;;  %541 = vrot.lane.b32.xlu1 %v2545_v0, %s2557_s28  ;;  %s2571_s27 = smov 94  }
  0x3f   : > { %2359 = vrot.lane.b32.xlu0 %v2312_v3, %s2558_s29  ;;  %2374 = vrot.lane.b32.xlu1 %v2312_v3, %s2559_s30 }
  0x43   : > { %522 = vrot.lane.b32.xlu0 %v2545_v0, %s2558_s29  ;;  %587 = vrot.lane.b32.xlu1 %v2545_v0, %s2559_s30  ;;  %s2582_s30 = smov 6  }
  0x47   : > { %2369 = vrot.lane.b32.xlu0 %v2312_v3, %s2560_s3  ;;  %2384 = vrot.lane.b32.xlu1 %v2312_v3, %s2547_s14 }
  0x4b   : > { %566 = vrot.lane.b32.xlu0 %v2545_v0, %s2560_s3  ;;  %2394 = vrot.lane.b32.xlu1 %v2312_v3, %s2561_s4 }
  0x4f   : > { %2379 = vrot.lane.b32.xlu0 %v2312_v3, %s2546_s12  ;;  %666 = vrot.lane.b32.xlu1 %v2545_v0, %s2561_s4 }
  0x53   : > { %2389 = vrot.lane.b32.xlu0 %v2312_v3, %s2549_s19  ;;  %2404 = vrot.lane.b32.xlu1 %v2312_v3, %s2548_s18 }
  0x57   : > { %2399 = vrot.lane.b32.xlu0 %v2312_v3, %s2562_s5  ;;  %2419 = vrot.lane.b32.xlu1 %v2641_v4, %s2563_s6 }
  0x5b   : > { %687 = vrot.lane.b32.xlu0 %v2545_v0, %s2562_s5  ;;  %773 = vrot.lane.b32.xlu1 %v2624_v1, %s2563_s6  ;;  %s145_s5 = scalar_lea.vmem %s3261_s2, %s2051_s13 }
  0x5f   : > { %2409 = vrot.lane.b32.xlu0 %v2641_v4, %s2550_s20  ;;  %2429 = vrot.lane.b32.xlu1 %v2641_v4, %s2551_s21 }
  0x63   : > { %2414 = vrot.lane.b32.xlu0 %v2641_v4, %s2564_s7  ;;  %814 = vrot.lane.b32.xlu1 %v2624_v1, %s2551_s21 }
  0x67   : > { %752 = vrot.lane.b32.xlu0 %v2624_v1, %s2564_s7  ;;  %2439 = vrot.lane.b32.xlu1 %v2641_v4, %s2565_s15 }
  0x6b   : > { %2424 = vrot.lane.b32.xlu0 %v2641_v4, %s2552_s22  ;;  %2444 = vrot.lane.b32.xlu1 %v2443_v8, %s2565_s15 }
  0x6f   : > { %794 = vrot.lane.b32.xlu0 %v2624_v1, %s2552_s22  ;;  %2454 = vrot.lane.b32.xlu1 %v2641_v4, %s2566_s16 }
  0x73   : > { %2434 = vrot.lane.b32.xlu0 %v2641_v4, %s2553_s23  ;;  %894 = vrot.lane.b32.xlu1 %v2624_v1, %s2566_s16 }
  0x77   : > { %832 = vrot.lane.b32.xlu0 %v2624_v1, %s2553_s23 }
  0x78   : > { %v202_v10 = vpop.permute.xlu1 %201 }
  0x7b   : > { %2449 = vrot.lane.b32.xlu0 %v2641_v4, %s2567_s24 }
  0x7c   : > { %v223_v12 = vpop.permute.xlu1 %222 }
  0x7f   : > { %873 = vrot.lane.b32.xlu0 %v2624_v1, %s2567_s24 }
  0x85   : > { %v2314_v14 = vpop.permute.xlu0 %2313  ;;  %v2329_v15 = vpop.permute.xlu1 %2328 }
  0x86   : > { %v2316_v18 = vunpack.i.h.bf16 %v2314_v14  ;;  %v2315_v19 = vunpack.i.l.bf16 %v2314_v14  ;;  %v2331_v24 = vunpack.i.h.bf16 %v2329_v15  ;;  %v2330_v25 = vunpack.i.l.bf16 %v2329_v15 }
  0x88   : > { %v209_v26 = vsel %vm3274_vm0, %v2315_v19, %v2316_v18  ;;  %v208_v29 = vsel %vm3274_vm0, %v202_v10, %v2315_v19  ;;  %v274_v36 = vsel %vm3262_vm4, %v2330_v25, %v2331_v24 }
  0x89   : > { %v2319_v20 = vpop.permute.xlu0 %2318  ;;  %v267_v21 = vpop.permute.xlu1 %266 }
  0x8a   : > { %v2321_v22 = vunpack.i.h.bf16 %v2319_v20  ;;  %v2320_v23 = vunpack.i.l.bf16 %v2319_v20  ;;  %v273_v40 = vsel %vm3262_vm4, %v267_v21, %v2330_v25  ;;  %vm3265_vm4 = vcmask 924672  }
  0x8c   : > { %v230_v27 = vsel %vm3271_vm2, %v2320_v23, %v2321_v22  ;;  %v229_v30 = vsel %vm3271_vm2, %v223_v12, %v2320_v23 }
  0x8d   : > { %v2324_v31 = vpop.permute.xlu0 %2323  ;;  %v2140_v32 = vpack.c.bf16 %v230_v27, %v209_v26  ;;  %v2143_v33 = vpack.c.bf16 %v229_v30, %v208_v29  ;;  %v292_v35 = vpop.permute.xlu1 %291 }
  0x8e   : > { %v2326_v37 = vunpack.i.h.bf16 %v2324_v31  ;;  %v2325_v38 = vunpack.i.l.bf16 %v2324_v31 }
  0x8f   : > { %2142 = vmatprep.subr.msk.bf16.mxu0 %vm2724_vm6, %v2140_v32 }
  0x90   : > { %v253_v39 = vsel %vm3263_vm7, %v2325_v38, %v2326_v37  ;;  %2145 = vmatpush1.bf16.msk.msra.mxu0 %vm2733_vm8, %v2143_v33 }
  0x91   : > { %v2146_v42 = vpack.c.bf16 %v274_v36, %v253_v39  ;;  %v246_v43 = vpop.permute.xlu0 %245  ;;  %v2344_v47 = vpop.permute.xlu1 %2343 }
  0x92   : > { %v252_v44 = vsel %vm3263_vm7, %v246_v43, %v2325_v38  ;;  %v2346_v51 = vunpack.i.h.bf16 %v2344_v47  ;;  %v2345_v52 = vunpack.i.l.bf16 %v2344_v47  ;;  %vm2781_vm7 = vmpackc.low %vm3269_vm10, %vm2568_vm5  ;;  %vm3266_vm5 = vcmask 908288  }
  0x93   : > { %v2149_v46 = vpack.c.bf16 %v273_v40, %v252_v44  ;;  %2148 = vmatprep.subr.msk.bf16.mxu0 %vm2750_vm11, %v2146_v42 }
  0x94   : > { %v341_v61 = vsel %vm3264_vm14, %v2345_v52, %v2346_v51 }
  0x95   : > { %v2334_v48 = vpop.permute.xlu0 %2333  ;;  %2151 = vmatpush1.bf16.msk.msra.mxu0 %vm2759_vm12, %v2149_v46  ;;  %v334_v60 = vpop.permute.xlu1 %333  ;;  %vm3306_vm12 = vcmask 121856  }
  0x96   : > { %v2336_v49 = vunpack.i.h.bf16 %v2334_v48  ;;  %v2335_v50 = vunpack.i.l.bf16 %v2334_v48  ;;  %v340_v5 = vsel %vm3264_vm14, %v334_v60, %v2345_v52  ;;  %vm3267_vm14 = vcmask 588800  }
  0x98   : > { %v298_v53 = vsel %vm3268_vm13, %v292_v35, %v2335_v50  ;;  %v299_v54 = vsel %vm3268_vm13, %v2335_v50, %v2336_v49  ;;  %vm528_vm13 = vcmask 261120  }
  0x99   : > { %v2152_v56 = vpack.c.bf16 %v299_v54, %v2627_v2  ;;  %v2155_v57 = vpack.c.bf16 %v298_v53, %v2624_v1  ;;  %v2339_v58 = vpop.permute.xlu0 %2338  ;;  %v357_v12 = vpop.permute.xlu1 %356 }
  0x9a   : > { %v2341_v62 = vunpack.i.h.bf16 %v2339_v58  ;;  %v2340_v63 = vunpack.i.l.bf16 %v2339_v58 }
  0x9b   : > { %2154 = vmatprep.subr.msk.bf16.mxu0 %vm2772_vm15, %v2152_v56 }
  0x9c   : > { %v320_v3 = vsel %vm3265_vm4, %v2340_v63, %v2341_v62  ;;  %2157 = vmatpush1.bf16.msk.msra.mxu0 %vm2781_vm7, %v2155_v57 }
  0x9d   : > { %v2158_v8 = vpack.c.bf16 %v341_v61, %v320_v3  ;;  %v313_v9 = vpop.permute.xlu0 %312 }
  0x9e   : > { %v319_v10 = vsel %vm3265_vm4, %v313_v9, %v2340_v63  ;;  %vm486_vm4 = vcmask 277504  }
  0x9f   : > { %v2161_v11 = vpack.c.bf16 %v340_v5, %v319_v10  ;;  %2160 = vmatprep.subr.msk.bf16.mxu0 %vm2724_vm6, %v2158_v8 }
  0xa1   : > { %v355_v13 = vpop.permute.xlu0 %354  ;;  %2163 = vmatpush1.bf16.msk.msra.mxu0 %vm2733_vm8, %v2161_v11 }
  0xa2   : > { %v360_v14 = vsel %vm3266_vm5, %v355_v13, %v357_v12 }
  0xa3   : > { %2086 = vmatprep.subr.msk.mxu0 %vm3270_vm9, %v360_v14  ;;  %vm178_vm9 = vcmp.ge.s32.totalorder %v2715_v17, 2 }
  0xa5   : > { %v353_v15 = vpop.permute.xlu0 %352 }
  0xa6   : > { %v359_v18 = vsel %vm3266_vm5, %v353_v15, %v355_v13  ;;  %vm507_vm5 = vcmask 269312  }
  0xa7   : > { %2087 = vmatpush1.msk.msra.mxu0 %vm3269_vm10, %v359_v18 }
  0xa8   : > { %2054 = vmatmul.mubr.msk.f32.vlgmr.msra.gmra.mrb[0].mxu0 %vm3267_vm14, %v2658_v6  ;;  %vm179_vm14 = vcmp.ge.s32.totalorder %v2713_v16, 2 }
  0xa9   : > { %1371 = vmatprep.mubr.f32.mxu0 %v2545_v0  ;;  %v2350_v20 = vpop.permute.xlu0 %2349  ;;  %vm2813_vm10 = vmpackc.low %vm181_vm1, %vm179_vm14  ;;  %vm547_vm1 = vcmask 252928  }
  0xaa   : > { %v2806_v19 = vpop.permute.xlu1 %388  ;;  %v2351_v21 = vunpack.i.l.bf16 %v2350_v20  ;;  %v2352_v25 = vunpack.i.h.bf16 %v2350_v20 }
  0xac   : > { %v488_v37 = vsel %vm486_vm4, %v2351_v21, %v2352_v25 }
  0xad   : > { %v481_v23 = vpop.permute.xlu0 %480 }
  0xae   : > { %v2355_v22 = vpop.permute.xlu1 %2354  ;;  %v487_v27 = vsel %vm486_vm4, %v481_v23, %v2351_v21  ;;  %vm2824_vm4 = vmpackc.low %vm180_vm3, %vm178_vm9  ;;  %vm572_vm3 = vcmask 244736  }
  0xaf   : > { %v2356_v24 = vunpack.i.l.bf16 %v2355_v22  ;;  %v2357_v26 = vunpack.i.h.bf16 %v2355_v22 }
  0xb1   : > { %v2360_v30 = vpop.permute.xlu0 %2359  ;;  %v509_v38 = vsel %vm507_vm5, %v2356_v24, %v2357_v26 }
  0xb2   : > { %v502_v29 = vpop.permute.xlu1 %501  ;;  %v2362_v33 = vunpack.i.h.bf16 %v2360_v30  ;;  %v2361_v35 = vunpack.i.l.bf16 %v2360_v30  ;;  %v2164_v43 = vpack.c.bf16 %v509_v38, %v488_v37  ;;  %v2572_v37 = vmov 90  }
  0xb3   : > { %v508_v31 = vsel %vm507_vm5, %v502_v29, %v2356_v24  ;;  %vm3276_vm5 = vcmp.lt.s32.totalorder %v2713_v16, 14  ;;  %2528 = vset.pattern.permute.xlu0 %v2572_v37  ;;  %v2573_v38 = vmov 17  }
  0xb4   : > { %v2167_v32 = vpack.c.bf16 %v508_v31, %v487_v27  ;;  %2166 = vmatprep.subr.msk.bf16.mxu1 %vm2813_vm10, %v2164_v43  ;;  %v530_v47 = vsel %vm528_vm13, %v2361_v35, %v2362_v33  ;;  %vm2840_vm2 = vmpackc.low %vm179_vm14, %vm3276_vm5  ;;  %2529 = vset.pattern.permute.xlu1 %v2573_v38  ;;  %vm3273_vm14 = vcmask 113664  }
  0xb5   : > { %v523_v39 = vpop.permute.xlu0 %522 }
  0xb6   : > { %v2365_v36 = vpop.permute.xlu1 %2364  ;;  %v529_v46 = vsel %vm528_vm13, %v523_v39, %v2361_v35  ;;  %2169 = vmatpush1.bf16.msk.msra.mxu1 %vm2824_vm4, %v2167_v32  ;;  %vm593_vm13 = vcmask 146432  }
  0xb7   : > { %v2367_v40 = vunpack.i.h.bf16 %v2365_v36  ;;  %v2366_v42 = vunpack.i.l.bf16 %v2365_v36 }
  0xb9   : > { %v2370_v50 = vpop.permute.xlu0 %2369  ;;  %v549_v52 = vsel %vm547_vm1, %v2366_v42, %v2367_v40 }
  0xba   : > { %v542_v49 = vpop.permute.xlu1 %541  ;;  %v2372_v53 = vunpack.i.h.bf16 %v2370_v50  ;;  %v2371_v54 = vunpack.i.l.bf16 %v2370_v50  ;;  %v2170_v56 = vpack.c.bf16 %v549_v52, %v530_v47 }
  0xbb   : > { %v548_v51 = vsel %vm547_vm1, %v542_v49, %v2366_v42  ;;  %vm3272_vm1 = vcmp.lt.s32.totalorder %v2715_v17, 14  ;;  %v2930_v42 = vld [vmem:[%s3260_s1 + $0x10] sm:$0xf] }
  0xbc   : > { %v2173_v57 = vpack.c.bf16 %v548_v51, %v529_v46  ;;  %2172 = vmatprep.subr.msk.bf16.mxu1 %vm2772_vm15, %v2170_v56  ;;  %v574_v63 = vsel %vm572_vm3, %v2371_v54, %v2372_v53 }
  0xbd   : > { %v567_v60 = vpop.permute.xlu0 %566 }
  0xbe   : > { %v2375_v58 = vpop.permute.xlu1 %2374  ;;  %2175 = vmatpush1.bf16.msk.msra.mxu1 %vm2781_vm7, %v2173_v57  ;;  %v573_v3 = vsel %vm572_vm3, %v567_v60, %v2371_v54  ;;  %vm2852_vm3 = vmpackc.low %vm178_vm9, %vm3272_vm1  ;;  %vm3298_vm9 = vcmask 130048   ;;  %vm3300_vm1 = vcmask 130048  }
  0xbf   : > { %v2377_v61 = vunpack.i.h.bf16 %v2375_v58  ;;  %v2376_v62 = vunpack.i.l.bf16 %v2375_v58 }
  0xc1   : > { %v595_v5 = vsel %vm593_vm13, %v2376_v62, %v2377_v61  ;;  %v2844_v11 = vpop.permute.xlu0 %2379 }
  0xc2   : > { %v588_v9 = vpop.permute.xlu1 %587  ;;  %v2176_v10 = vpack.c.bf16 %v595_v5, %v574_v63  ;;  %v2382_v13 = vunpack.i.h.bf16 %v2844_v11  ;;  %v2381_v14 = vunpack.i.l.bf16 %v2844_v11 }
  0xc3   : > { %v594_v12 = vsel %vm593_vm13, %v588_v9, %v2376_v62  ;;  %vm3299_vm13 = vcmask 121856  }
  0xc4   : > { %v2179_v18 = vpack.c.bf16 %v594_v12, %v573_v3  ;;  %2178 = vmatprep.subr.msk.bf16.mxu1 %vm2840_vm2, %v2176_v10  ;;  %v615_v21 = vsel %vm3274_vm0, %v2381_v14, %v2382_v13 }
  0xc5   : > { %v2918_v36 = vpop.permute.xlu0 %2389 }
  0xc6   : > { %v2858_v20 = vpop.permute.xlu1 %2384  ;;  %2181 = vmatpush1.bf16.msk.msra.mxu1 %vm2852_vm3, %v2179_v18  ;;  %v2392_v9 = vunpack.i.h.bf16 %v2918_v36  ;;  %v2391_v10 = vunpack.i.l.bf16 %v2918_v36 }
  0xc7   : > { %v2387_v22 = vunpack.i.h.bf16 %v2858_v20  ;;  %v2386_v23 = vunpack.i.l.bf16 %v2858_v20 }
  0xc9   : > { %v635_v24 = vsel %vm3298_vm9, %v2386_v23, %v2387_v22  ;;  %v2923_v39 = vpop.permute.xlu0 %2399  ;;  %v653_v22 = vsel %vm3299_vm13, %v2391_v10, %v2392_v9  ;;  %vm693_vm9 = vcmask 15360   ;;  %vm3301_vm13 = vcmp.lt.s32.totalorder %v2713_v16, 15 }
  0xca   : > { %v2182_v25 = vpack.c.bf16 %v635_v24, %v615_v21  ;;  %v2395_v40 = vpop.permute.xlu1 %2394  ;;  %v2402_v24 = vunpack.i.h.bf16 %v2923_v39 }
  0xcb   : > { %v2397_v12 = vunpack.i.h.bf16 %v2395_v40  ;;  %v2396_v13 = vunpack.i.l.bf16 %v2395_v40 }
  0xcc   : > { %2184 = vmatprep.subr.msk.bf16.mxu1 %vm2724_vm6, %v2182_v25 }
  0xcd   : > { %v2932_v43 = vpop.permute.xlu0 %687 }
  0xd1   : > { %v2937_v46 = vpop.permute.xlu0 %2409 }
  0xd5   : > { %v2942_v49 = vpop.permute.xlu0 %2414 }
  0xd9   : > { %v2946_v51 = vpop.permute.xlu0 %752 }
  0xdd   : > { %v2950_v52 = vpop.permute.xlu0 %2424 }
  0xe1   : > { %v2954_v54 = vpop.permute.xlu0 %794 }
  0xe5   : > { %v2958_v57 = vpop.permute.xlu0 %2434 }
  0xe9   : > { %v2962_v60 = vpop.permute.xlu0 %832 }
  0xed   : > { %v2968_v63 = vpop.permute.xlu0 %2449 }
  0xf1   : > { %v2972_v5 = vpop.permute.xlu0 %873 }
 0x17b   : > { %v461_v26 = vpop.f32.mrb[0].mxu0 }
 0x17c   : > { %v462_v27 = vadd.f32 %v461_v26, %v2806_v19  ;;  %v463_v29 = vpop.f32.mrb[1].mxu0 }
 0x17d   : > { %v464_v32 = vadd.f32 %v463_v29, %v2806_v19  ;;  %v674_v29 = vsel %vm3273_vm14, %v2396_v13, %v2397_v12  ;;  %vm3002_vm14 = vmpackc.low %vm3276_vm5, %vm3301_vm13  ;;  %vm3307_vm13 = vcmp.lt.s32.totalorder %v2715_v17, 15  ;;  %vm3308_vm5 = vcmp.lt.s32.totalorder %v2715_v17, 14 }
 0x17e   : > { %v2873_v30 = vmax.f32 %v462_v27, 0.0  ;;  %v2401_v27 = vunpack.i.l.bf16 %v2923_v39  ;;  %v2188_v20 = vpack.c.bf16 %v674_v29, %v653_v22  ;;  %vm3019_vm11 = vmpackc.low %vm3308_vm5, %vm3307_vm13  ;;  %vm758_vm5 = vcmask 1031168  }
 0x17f   : > { %v2884_v33 = vmax.f32 %v464_v32, 0.0  ;;  %vm3313_vm13 = vcmask 916480  }
 0x180   : > { %v2463_v31 = vpack.i.bf16 %v2873_v30, %v2545_v0  ;;  %v695_v11 = vsel %vm693_vm9, %v2401_v27, %v2402_v24 }
 0x181   : > { %v2493_v35 = vpack.i.bf16 %v2884_v33, %v2624_v1  ;;  %v2498_v19 = vpack.i.bf16 %v2545_v0, %v2884_v33 }
 0x182   : > { %2464 = vrot.lane.b32.xlu1 %v2463_v31, %s2547_s14  ;;  %2459 = vrot.lane.b32.xlu0 %v2463_v31, %s2546_s12 }
 0x186   : > { %2479 = vrot.lane.b32.xlu1 %v2641_v4, %s2569_s25  ;;  %2469 = vrot.lane.b32.xlu0 %v2463_v31, %s2549_s19 }
 0x18a   : > { %934 = vrot.lane.b32.xlu1 %v2624_v1, %s2569_s25  ;;  %2474 = vrot.lane.b32.xlu0 %v2641_v4, %s2570_s26  ;;  %v2897_v4 = vld [vmem:[%s3260_s1 + $0x10] sm:$0xff] }
 0x18e   : > { %2484 = vrot.lane.b32.xlu1 %v2463_v31, %s2548_s18  ;;  %915 = vrot.lane.b32.xlu0 %v2624_v1, %s2570_s26 }
 0x192   : > { %2494 = vrot.lane.b32.xlu1 %v2493_v35, %s2550_s20  ;;  %2489 = vrot.lane.b32.xlu0 %v2463_v31, %s2550_s20  ;;  %s2575_s20 = smov 37  }
 0x196   : > { %957 = vrot.lane.b32.xlu1 %v2627_v2, %s2571_s27  ;;  %959 = vrot.lane.b32.xlu0 %v2545_v0, %s2571_s27 }
 0x19a   : > { %955 = vrot.lane.b32.xlu1 %v2624_v1, %s2571_s27  ;;  %1030 = vrot.lane.b32.xlu0 %v2897_v4, %s2565_s15 }
 0x19e   : > { %1221 = vrot.lane.b32.xlu1 %v2873_v30, %s2552_s22  ;;  %2499 = vrot.lane.b32.xlu0 %v2498_v19, %s2546_s12  ;;  %s2574_s12 = smov 55  }
 0x1a2   : > { %2504 = vrot.lane.b32.xlu1 %v2498_v19, %s2547_s14  ;;  %2509 = vrot.lane.b32.xlu0 %v2498_v19, %s2549_s19 }
 0x1a6   : > { %2514 = vrot.lane.b32.xlu1 %v2498_v19, %s2548_s18  ;;  %1241 = vrot.lane.b32.xlu0 %v2873_v30, %s2551_s21 }
 0x1aa   : > { %2519 = vrot.lane.b32.xlu1 %v2498_v19, %s2552_s22  ;;  %2524 = vrot.lane.b32.xlu0 %v2498_v19, %s2551_s21  ;;  %s2576_s21 = smov 28   ;;  %s2577_s22 = smov 19  }
 0x1ae   : > { %1259 = vrot.lane.b32.xlu1 %v2873_v30, %s2553_s23  ;;  %1263 = vrot.lane.b32.xlu0 %v2545_v0, %s2553_s23 }
 0x1b2   : > { %1261 = vrot.lane.b32.xlu1 %v2884_v33, %s2553_s23  ;;  %1299 = vrot.lane.b32.xlu0 %v2658_v6, %s2574_s12  ;;  %v667_v6 = vpop.permute.xlu1 %666  ;;  %s2581_s23 = smov 10  }
 0x1b6   : > { %1301 = vrot.lane.b32.xlu1 %v2693_v7, %s2574_s12  ;;  %1023 = vperm.xlu0 %2528, %v2897_v4   ;;  %v2939_v47 = vpop.permute.xlu1 %2404 }
 0x1b7   : > { %v2407_v31 = vunpack.i.h.bf16 %v2939_v47  ;;  %v2406_v32 = vunpack.i.l.bf16 %v2939_v47 }
 0x1ba   : > { %1294 = vperm.xlu1 %2529, %v2693_v7   ;;  %1382 = vrot.lane.b32.xlu0 %v2930_v42, %s2575_s20  ;;  %v2944_v50 = vpop.permute.xlu1 %2419 }
 0x1bb   : > { %2530 = vset.pattern.permute.xlu0 %v2578_v28 }
 0x1be   : > { %1468 = vrot.lane.b32.xlu1 %v2930_v42, %s2576_s21  ;;  %v2948_v7 = vpop.permute.xlu1 %773  ;;  %1546 = vperm.xlu0 %2530, %v2930_v42  }
 0x1c2   : > { %1557 = vrot.lane.b32.xlu1 %v2930_v42, %s2577_s22  ;;  %v2952_v53 = vpop.permute.xlu1 %2429 }
 0x1c6   : > { %v2956_v56 = vpop.permute.xlu1 %814 }
 0x1ca   : > { %v2960_v58 = vpop.permute.xlu1 %2439 }
 0x1ce   : > { %v2964_v61 = vpop.permute.xlu1 %2444 }
 0x1d2   : > { %v2966_v62 = vpop.permute.xlu1 %2454 }
 0x1d6   : > { %v2970_v3 = vpop.permute.xlu1 %894 }
 0x1f4   : > { %v2976_v18 = vpop.permute.xlu1 %2464  ;;  %v2978_v21 = vpop.permute.xlu0 %2459 }
 0x1f5   : > { %v2466_v25 = vunpack.i.l.bf16 %v2976_v18  ;;  %v2461_v26 = vunpack.i.l.bf16 %v2978_v21 }
 0x1f7   : > { %v634_v35 = vsel %vm3300_vm1, %v2466_v25, %v2386_v23  ;;  %v614_v19 = vsel %vm3274_vm0, %v2461_v26, %v2381_v14  ;;  %vm3304_vm1 = vcmask 7168   ;;  %vm3305_vm0 = vcmask 113664  }
 0x1f8   : > { %v2185_v36 = vpack.c.bf16 %v634_v35, %v614_v19  ;;  %v2994_v37 = vpop.permute.xlu1 %2479  ;;  %v2996_v38 = vpop.permute.xlu0 %2469  ;;  %v715_v14 = vsel %vm3304_vm1, %v2406_v32, %v2407_v31  ;;  %v673_v40 = vsel %vm3305_vm0, %v667_v6, %v2396_v13  ;;  %v2412_v6 = vunpack.i.h.bf16 %v2937_v46 }
 0x1f9   : > { %v2471_v23 = vunpack.i.l.bf16 %v2996_v38  ;;  %v2194_v25 = vpack.c.bf16 %v715_v14, %v695_v11  ;;  %v2422_v13 = vunpack.i.h.bf16 %v2944_v50  ;;  %v2421_v31 = vunpack.i.l.bf16 %v2944_v50 }
 0x1fa   : > { %2187 = vmatpush1.bf16.msk.msra.mxu1 %vm2733_vm8, %v2185_v36  ;;  %v2417_v35 = vunpack.i.h.bf16 %v2942_v49  ;;  %v2416_v19 = vunpack.i.l.bf16 %v2942_v49  ;;  %vm3311_vm0 = vcmask 1039360  }
 0x1fb   : > { %v652_v47 = vsel %vm3306_vm12, %v2471_v23, %v2391_v10  ;;  %2190 = vmatprep.subr.msk.bf16.mxu1 %vm3002_vm14, %v2188_v20  ;;  %v2411_v10 = vunpack.i.l.bf16 %v2937_v46  ;;  %vm779_vm12 = vcmask 932864   ;;  %v694_v20 = vsel %vm693_vm9, %v2932_v43, %v2401_v27  ;;  %vm3312_vm9 = vmmov %vm3311_vm0 }
 0x1fc   : > { %v2191_v12 = vpack.c.bf16 %v673_v40, %v652_v47  ;;  %v3023_v22 = vpop.permute.xlu1 %934  ;;  %v3025_v24 = vpop.permute.xlu0 %2474  ;;  %v781_v49 = vsel %vm779_vm12, %v2421_v31, %v2422_v13  ;;  %v760_v47 = vsel %vm758_vm5, %v2416_v19, %v2417_v35  ;;  %v2427_v43 = vunpack.i.h.bf16 %v2950_v52 }
 0x1fd   : > { %v739_v36 = vsel %vm3311_vm0, %v2411_v10, %v2412_v6  ;;  %v2431_v6 = vunpack.i.l.bf16 %v2952_v53  ;;  %v2426_v27 = vunpack.i.l.bf16 %v2950_v52  ;;  %v759_v13 = vsel %vm758_vm5, %v2946_v51, %v2416_v19 }
 0x1fe   : > { %2193 = vmatpush1.bf16.msk.msra.mxu1 %vm3019_vm11, %v2191_v12  ;;  %v2200_v50 = vpack.c.bf16 %v739_v36, %v2627_v2  ;;  %v780_v2 = vsel %vm779_vm12, %v2948_v7, %v2421_v31  ;;  %v2206_v35 = vpack.c.bf16 %v781_v49, %v760_v47  ;;  %v2442_v36 = vunpack.i.h.bf16 %v2960_v58 }
 0x1ff   : > { %2196 = vmatprep.subr.msk.bf16.mxu1 %vm2813_vm10, %v2194_v25  ;;  %v2432_v25 = vunpack.i.h.bf16 %v2952_v53  ;;  %vm3314_vm0 = vcmask 924672   ;;  %vm858_vm12 = vcmask 900096   ;;  %vm900_vm5 = vcmask 793600  }
 0x200   : > { %v3034_v26 = vpop.permute.xlu1 %2484  ;;  %v3036_v29 = vpop.permute.xlu0 %915  ;;  %v801_v31 = vsel %vm3314_vm0, %v2426_v27, %v2427_v43  ;;  %v2446_v19 = vunpack.i.l.bf16 %v2964_v61  ;;  %v2451_v49 = vunpack.i.l.bf16 %v2968_v63  ;;  %v2476_v43 = vunpack.i.l.bf16 %v3025_v24 }
 0x201   : > { %v2486_v46 = vunpack.i.l.bf16 %v3034_v26  ;;  %v821_v7 = vsel %vm3313_vm13, %v2431_v6, %v2432_v25  ;;  %v2487_v9 = vunpack.i.h.bf16 %v3034_v26 }
 0x203   : > { %v714_v23 = vsel %vm3304_vm1, %v2486_v46, %v2406_v32  ;;  %vm3315_vm1 = vmmov %vm3313_vm13  ;;  %vm3317_vm13 = vcmask 908288  }
 0x204   : > { %v2197_v11 = vpack.c.bf16 %v714_v23, %v694_v20  ;;  %v3046_v14 = vpop.permute.xlu1 %2494  ;;  %v3048_v40 = vpop.permute.xlu0 %2489  ;;  %v2437_v20 = vunpack.i.h.bf16 %v2958_v57  ;;  %v2436_v23 = vunpack.i.l.bf16 %v2958_v57  ;;  %v820_v51 = vsel %vm3315_vm1, %v2956_v56, %v2431_v6  ;;  %vm3319_vm1 = vmmov %vm3317_vm13 }
 0x205   : > { %v2496_v12 = vunpack.i.l.bf16 %v3046_v14  ;;  %v2457_v57 = vunpack.i.h.bf16 %v2966_v62  ;;  %v2212_v56 = vpack.c.bf16 %v821_v7, %v801_v31  ;;  %v2477_v6 = vunpack.i.h.bf16 %v3025_v24 }
 0x206   : > { %2199 = vmatpush1.bf16.msk.msra.mxu1 %vm2824_vm4, %v2197_v11  ;;  %v2456_v11 = vunpack.i.l.bf16 %v2966_v62  ;;  %v2482_v24 = vunpack.i.h.bf16 %v2994_v37 }
 0x207   : > { %v738_v32 = vsel %vm3312_vm9, %v2496_v12, %v2411_v10  ;;  %2202 = vmatprep.subr.msk.bf16.mxu1 %vm2772_vm15, %v2200_v50  ;;  %v2441_v10 = vunpack.i.l.bf16 %v2960_v58  ;;  %vm3316_vm9 = vmmov %vm3314_vm0  ;;  %v2452_v50 = vunpack.i.h.bf16 %v2968_v63  ;;  %vm879_vm0 = vcmask 801792  }
 0x208   : > { %v2203_v53 = vpack.c.bf16 %v738_v32, %v2624_v1  ;;  %v3068_v46 = vpop.permute.xlu1 %957  ;;  %v3070_v52 = vpop.permute.xlu0 %959  ;;  %v2209_v1 = vpack.c.bf16 %v780_v2, %v759_v13  ;;  %v800_v58 = vsel %vm3316_vm9, %v2954_v54, %v2426_v27  ;;  %v839_v54 = vsel %vm3317_vm13, %v2436_v23, %v2437_v20 }
 0x209   : > { %v860_v25 = vsel %vm858_vm12, %v2441_v10, %v2442_v36  ;;  %v2215_v8 = vpack.c.bf16 %v820_v51, %v800_v58  ;;  %v859_v62 = vsel %vm858_vm12, %v2446_v19, %v2441_v10  ;;  %v838_v63 = vsel %vm3319_vm1, %v2962_v60, %v2436_v23 }
 0x20a   : > { %2205 = vmatpush1.bf16.msk.msra.mxu1 %vm2781_vm7, %v2203_v53  ;;  %v902_v27 = vsel %vm900_vm5, %v2456_v11, %v2457_v57  ;;  %v881_v32 = vsel %vm879_vm0, %v2451_v49, %v2452_v50  ;;  %vm921_vm9 = vcmask 785408   ;;  %v2218_v13 = vpack.c.bf16 %v860_v25, %v839_v54 }
 0x20b   : > { %2208 = vmatprep.subr.msk.bf16.mxu1 %vm2840_vm2, %v2206_v35  ;;  %vm3318_vm2 = vcmask 588800   ;;  %v901_v35 = vsel %vm900_vm5, %v2970_v3, %v2456_v11  ;;  %v880_v60 = vsel %vm879_vm0, %v2972_v5, %v2451_v49  ;;  %v2481_v53 = vunpack.i.l.bf16 %v2994_v37 }
 0x20c   : > { %v3091_v47 = vpop.permute.xlu1 %955  ;;  %v3093_v12 = vpop.permute.xlu0 %1030  ;;  %v923_v10 = vsel %vm921_vm9, %v2476_v43, %v2477_v6  ;;  %v2221_v23 = vpack.c.bf16 %v859_v62, %v838_v63  ;;  %v2224_v3 = vpack.c.bf16 %v902_v27, %v881_v32  ;;  %v2227_v7 = vpack.c.bf16 %v901_v35, %v880_v60 }
 0x20d   : > { %2055 = vmatprep.mubr.msk.f32.mxu1 %vm3318_vm2, %v3093_v12  ;;  %v2462_v5 = vunpack.i.h.bf16 %v2978_v21  ;;  %v2467_v37 = vunpack.i.h.bf16 %v2976_v18  ;;  %v2472_v57 = vunpack.i.h.bf16 %v2996_v38  ;;  %vm3320_vm5 = vcmask 138240  }
 0x20e   : > { %2211 = vmatpush1.bf16.msk.msra.mxu1 %vm2852_vm3, %v2209_v1  ;;  %vm940_vm3 = vcmask 777216   ;;  %vm3322_vm13 = vcmask 130048   ;;  %v2497_v54 = vunpack.i.h.bf16 %v3046_v14  ;;  %v2491_v38 = vunpack.i.l.bf16 %v3048_v40 }
 0x20f   : > { %2214 = vmatprep.subr.msk.bf16.mxu1 %vm2724_vm6, %v2212_v56  ;;  %v942_v51 = vsel %vm940_vm3, %v2481_v53, %v2482_v24  ;;  %vm3323_vm0 = vmmov %vm3322_vm13  ;;  %v922_v6 = vsel %vm921_vm9, %v3036_v29, %v2476_v43  ;;  %v2492_v14 = vunpack.i.h.bf16 %v3048_v40  ;;  %vm3326_vm1 = vcmask 7168  }
 0x210   : > { %v3110_v2 = vpop.permute.xlu1 %1221  ;;  %v2500_v15 = vpop.permute.xlu0 %2499  ;;  %v2230_v11 = vpack.c.bf16 %v942_v51, %v923_v10  ;;  %vm3327_vm9 = vmmov %vm3326_vm1 }
 0x211   : > { %v2502_v36 = vunpack.i.h.bf16 %v2500_v15  ;;  %v2501_v20 = vunpack.i.l.bf16 %v2500_v15  ;;  %v941_v15 = vsel %vm940_vm3, %v3023_v22, %v2481_v53  ;;  %vm3328_vm3 = vcmask 1039360  }
 0x212   : > { %2217 = vmatpush1.bf16.msk.msra.mxu1 %vm2733_vm8, %v2215_v8  ;;  %v2233_v22 = vpack.c.bf16 %v941_v15, %v922_v6  ;;  %v1208_v48 = vsel %vm3328_vm3, %v2497_v54, %v2491_v38  ;;  %v1896_v6 = vld [vmem:[%s3260_s1 + $0x18] sm:$0xff] }
 0x213   : > { %2220 = vmatprep.subr.msk.bf16.mxu1 %vm3002_vm14, %v2218_v13  ;;  %v1125_v50 = vsel %vm3320_vm5, %v2502_v36, %v2462_v5  ;;  %vm3321_vm14 = vmmov %vm3320_vm5 }
 0x214   : > { %v2505_v31 = vpop.permute.xlu1 %2504  ;;  %v2510_v1 = vpop.permute.xlu0 %2509  ;;  %v1126_v49 = vsel %vm3321_vm14, %v2462_v5, %v2501_v20  ;;  %vm3330_vm5 = vmmov %vm3328_vm3  ;;  %vm3331_vm14 = vcmp.lt.s32.totalorder %v2713_v16, 14  ;;  %vm3341_vm3 = vcmp.lt.s32.totalorder %v2715_v17, 15 }
 0x215   : > { %v2507_v58 = vunpack.i.h.bf16 %v2505_v31  ;;  %v2506_v19 = vunpack.i.l.bf16 %v2505_v31  ;;  %v2512_v39 = vunpack.i.h.bf16 %v2510_v1  ;;  %v2511_v18 = vunpack.i.l.bf16 %v2510_v1 }
 0x216   : > { %2223 = vmatpush1.bf16.msk.msra.mxu1 %vm3019_vm11, %v2221_v23  ;;  %vm961_vm11 = vcmask 769024   ;;  %v1207_v23 = vsel %vm3330_vm5, %v2492_v14, %v2497_v54  ;;  %vm1559_vm5 = vcmask 31744  }
 0x217   : > { %v1145_v21 = vsel %vm3322_vm13, %v2507_v58, %v2467_v37  ;;  %v1146_v56 = vsel %vm3323_vm0, %v2467_v37, %v2506_v19  ;;  %2226 = vmatprep.subr.msk.bf16.mxu1 %vm2813_vm10, %v2224_v3  ;;  %vm3324_vm10 = vcmask 121856   ;;  %v963_v20 = vsel %vm961_vm11, %v3068_v46, %v3070_v52 }
 0x218   : > { %v2236_v25 = vpack.c.bf16 %v1146_v56, %v1126_v49  ;;  %v2239_v8 = vpack.c.bf16 %v1145_v21, %v1125_v50  ;;  %v2515_v62 = vpop.permute.xlu1 %2514  ;;  %v1242_v63 = vpop.permute.xlu0 %1241  ;;  %v1163_v44 = vsel %vm3324_vm10, %v2512_v39, %v2472_v57  ;;  %vm3325_vm2 = vmmov %vm3324_vm10  ;;  %v2248_v3 = vpack.c.bf16 %v1208_v48, %v2884_v33  ;;  %v3211_v56 = vld [vmem:[%s2621_s17 + $0x8] sm:$0xff] }
 0x219   : > { %v2517_v27 = vunpack.i.h.bf16 %v2515_v62  ;;  %v2516_v32 = vunpack.i.l.bf16 %v2515_v62  ;;  %v1164_v26 = vsel %vm3325_vm2, %v2472_v57, %v2511_v18  ;;  %vm3332_vm13 = vcmask 924672   ;;  %v3216_v18 = vld [vmem:[%s2621_s17] sm:$0xff] }
 0x21a   : > { %2229 = vmatpush1.bf16.msk.msra.mxu1 %vm2824_vm4, %v2227_v7  ;;  %2238 = vmatprep.subr.msk.bf16.mxu0 %vm2724_vm6, %v2236_v25  ;;  %vm3329_vm4 = vnez %v3283_v41  ;;  %v2447_v7 = vunpack.i.h.bf16 %v2964_v61  ;;  %vm3333_vm0 = vcmask 916480   ;;  %vm3334_vm10 = vnez %v3285_v45 }
 0x21b   : > { %v1183_v29 = vsel %vm3326_vm1, %v2517_v27, %v2487_v9  ;;  %v1184_v43 = vsel %vm3327_vm9, %v2487_v9, %v2516_v32  ;;  %2232 = vmatprep.subr.msk.bf16.mxu1 %vm2772_vm15, %v2230_v11  ;;  %2241 = vmatpush1.bf16.msk.msra.mxu0 %vm2733_vm8, %v2239_v8  ;;  %v962_v41 = vsel %vm961_vm11, %v3091_v47, %v3068_v46  ;;  %vm3335_vm2 = vcmp.lt.s32.totalorder %v2715_v17, 14  ;;  %vm3336_vm1 = vmmov %vm3332_vm13 }
 0x21c   : > { %v2242_v13 = vpack.c.bf16 %v1184_v43, %v1164_v26  ;;  %v2245_v35 = vpack.c.bf16 %v1183_v29, %v1163_v44  ;;  %v2520_v60 = vpop.permute.xlu1 %2519  ;;  %v2525_v24 = vpop.permute.xlu0 %2524  ;;  %v2251_v33 = vpack.c.bf16 %v1207_v23, %v2873_v30  ;;  %v1032_v61 = vsel %vm858_vm12, %v2447_v7, %v3093_v12  ;;  %vm3337_vm9 = vmmov %vm3333_vm0 }
 0x21d   : > { %v2522_v40 = vunpack.i.h.bf16 %v2520_v60  ;;  %v2521_v53 = vunpack.i.l.bf16 %v2520_v60  ;;  %v2527_v36 = vunpack.i.h.bf16 %v2525_v24  ;;  %v2526_v10 = vunpack.i.l.bf16 %v2525_v24 }
 0x21e   : > { %2235 = vmatpush1.bf16.msk.msra.mxu1 %vm2781_vm7, %v2233_v22  ;;  %2244 = vmatprep.subr.msk.bf16.mxu0 %vm3329_vm4, %v2242_v13  ;;  %vm3338_vm12 = vcmask 908288   ;;  %vm3339_vm11 = vcmp.lt.s32.totalorder %v2713_v16, 15  ;;  %vm3342_vm4 = vcmask 588800   ;;  %v2579_v58 = vmov 99  }
 0x21f   : > { %2126 = vmatprep.subr.msk.mxu1 %vm3331_vm14, %v963_v20  ;;  %v1228_v5 = vsel %vm3332_vm13, %v2521_v53, %v2522_v40  ;;  %v1248_v31 = vsel %vm3333_vm0, %v2526_v10, %v2527_v36  ;;  %2247 = vmatpush1.bf16.msk.msra.mxu0 %vm3334_vm10, %v2245_v35  ;;  %v1227_v45 = vsel %vm3336_vm1, %v3110_v2, %v2521_v53  ;;  %v2580_v16 = vmov 113  }
 0x220   : > { %v1260_v52 = vpop.permute.xlu1 %1259  ;;  %2250 = vmatprep.subr.msk.bf16.mxu0 %vm2772_vm15, %v2248_v3  ;;  %v1247_v1 = vsel %vm3337_vm9, %v1242_v63, %v2526_v10  ;;  %v2254_v37 = vpack.c.bf16 %v1248_v31, %v1228_v5  ;;  %v1264_v51 = vpop.permute.xlu0 %1263  ;;  %vm1303_vm15 = vcmask 449536   ;;  %2531 = vset.pattern.permute.xlu1 %v2579_v58  ;;  %v2583_v27 = vmov 126  }
 0x221   : > { %v2257_v30 = vpack.c.bf16 %v1247_v1, %v1227_v45  ;;  %1461 = vperm.xlu1 %2531, %v2930_v42   ;;  %2532 = vset.pattern.permute.xlu0 %v2580_v16  ;;  %vm3343_vm14 = vcmask 7168  }
 0x222   : > { %2127 = vmatpush1.msk.msra.mxu1 %vm3335_vm2, %v962_v41  ;;  %1554 = vperm.xlu0 %2532, %v2930_v42  }
 0x223   : > { %1101 = vmatmul.mubr.f32.vlgmr.msra.gmra.mrb[0].mxu1 %v1032_v61  ;;  %2253 = vmatpush1.bf16.msk.msra.mxu0 %vm2781_vm7, %v2251_v33  ;;  %vm3340_vm7 = vmmov %vm3338_vm12  ;;  %v2584_v33 = vmov 3  }
 0x224   : > { %v1262_v55 = vpop.permute.xlu1 %1261  ;;  %1451 = vmatprep.mubr.f32.mxu1 %v2545_v0  ;;  %2256 = vmatprep.subr.msk.bf16.mxu0 %vm2724_vm6, %v2254_v37  ;;  %v1300_v46 = vpop.permute.xlu0 %1299  ;;  %vm1384_vm6 = vcmask 64512  }
 0x225   : > { %v1266_v47 = vsel %vm3338_vm12, %v1262_v55, %v1264_v51  ;;  %v1265_v2 = vsel %vm3340_vm7, %v1260_v52, %v1262_v55  ;;  %1640 = vrot.lane.b32.xlu1 %v2930_v42, %s2581_s23 }
 0x226   : > { %2533 = vset.pattern.permute.xlu0 %v2583_v27 }
 0x227   : > { %2259 = vmatpush1.bf16.msk.msra.mxu0 %vm2733_vm8, %v2257_v30  ;;  %vm1562_vm8 = vcmask 1043456   ;;  %1886 = vperm.xlu0 %2533, %v2930_v42  }
 0x228   : > { %v1302_v12 = vpop.permute.xlu1 %1301  ;;  %2138 = vmatprep.subr.msk.mxu0 %vm3339_vm11, %v1266_v47 }
 0x229   : > { %v1304_v59 = vsel %vm1303_vm15, %v1300_v46, %v1302_v12  ;;  %1721 = vrot.lane.b32.xlu1 %v2930_v42, %s2561_s4 }
 0x22b   : > { %2139 = vmatpush1.msk.msra.mxu0 %vm3341_vm3, %v1265_v2  ;;  %2534 = vset.pattern.permute.xlu0 %v2584_v33 }
 0x22c   : > { %2056 = vmatmul.mubr.msk.f32.vlgmr.msra.gmra.mrb[2].mxu0 %vm3342_vm4, %v1304_v59  ;;  %1899 = vperm.xlu0 %2534, %v1896_v6  }
 0x22d   : > { %1536 = vmatprep.mubr.f32.mxu0 %v2545_v0  ;;  %1802 = vrot.lane.b32.xlu1 %v2930_v42, %s2582_s30 }
 0x231   : > { %1903 = vrot.lane.b32.xlu1 %v2897_v4, %s2548_s18 }
 0x235   : > { %v1024_v17 = vpop.permute.xlu0 %1023  ;;  %1905 = vrot.lane.b32.xlu1 %v1896_v6, %s2548_s18 }
 0x239   : > { %v1295_v34 = vpop.permute.xlu1 %1294  ;;  %v1383_v9 = vpop.permute.xlu0 %1382 }
 0x23d   : > { %v1469_v21 = vpop.permute.xlu1 %1468  ;;  %v1547_v15 = vpop.permute.xlu0 %1546 }
 0x241   : > { %v1558_v4 = vpop.permute.xlu1 %1557 }
 0x2a0   : > { %v1462_v26 = vpop.permute.xlu1 %1461 }
 0x2a1   : > { %v1555_v20 = vpop.permute.xlu0 %1554 }
 0x2a4   : > { %v1641_v24 = vpop.permute.xlu1 %1640 }
 0x2a6   : > { %v1887_v61 = vpop.permute.xlu0 %1886 }
 0x2a8   : > { %v1722_v31 = vpop.permute.xlu1 %1721 }
 0x2ab   : > { %v1900_v2 = vpop.permute.xlu0 %1899 }
 0x2ac   : > { %v1803_v41 = vpop.permute.xlu1 %1802 }
 0x2b0   : > { %v1904_v1 = vpop.permute.xlu1 %1903 }
 0x2b4   : > { %v1906_v12 = vpop.permute.xlu1 %1905 }
 0x2b5   : > { %v1907_v59 = vsel %vm3343_vm14, %v1904_v1, %v1906_v12 }
 0x2f6   : > { %v1102_v19 = vpop.f32.mrb[0].mxu1 }
 0x2f7   : > { %v1103_v57 = vadd.f32 %v1102_v19, %v1024_v17  ;;  %v1104_v11 = vpop.f32.mrb[1].mxu1 }
 0x2f8   : > { %v1105_v50 = vadd.f32 %v1104_v11, %v1024_v17 }
 0x2f9   : > { %v1107_v49 = vmax.f32 %v1103_v57, 0.0 }
 0x2fa   : > { %v1108_v39 = vmax.f32 %v1105_v50, 0.0 }
 0x2fc   : > { %1472 = vmatprep.subr.mxu0 %v1108_v39 }
 0x2fd   : > { %1473 = vmatpush1.msra.mxu0 %v1107_v49 }
 0x2fe   : > { %2058 = vmatmul.mubr.msk.f32.vlgmr.msra.gmra.mrb[4].mxu0 %vm1384_vm6, %v1469_v21  ;;  %2059 = vmatprep.subr.msk.mxu0 %vm1562_vm8, %v3211_v56 }
 0x2ff   : > { %2060 = vmatpush1.msk.msra.mxu0 %vm1562_vm8, %v3216_v18  ;;  %1633 = vmatprep.mubr.f32.mxu0 %v2545_v0  ;;  %v1373_v54 = vpop.f32.mrb[2].mxu0 }
 0x300   : > { %v1374_v38 = vadd.f32 %v1373_v54, %v1295_v34  ;;  %v1375_v25 = vpop.f32.mrb[3].mxu0 }
 0x301   : > { %v1376_v8 = vadd.f32 %v1375_v25, %v1295_v34 }
 0x302   : > { %2061 = vmatmul.mubr.msk.f32.vlgmr.msra.gmra.mrb[6].mxu0 %vm1559_vm5, %v1558_v4  ;;  %v1378_v63 = vmax.f32 %v1374_v38, 0.0 }
 0x303   : > { %1714 = vmatprep.mubr.f32.mxu0 %v2545_v0  ;;  %v1379_v62 = vmax.f32 %v1376_v8, 0.0 }
 0x305   : > { %1387 = vmatprep.subr.mxu1 %v1379_v62 }
 0x306   : > { %1388 = vmatpush1.msra.mxu1 %v1378_v63 }
 0x307   : > { %2057 = vmatmul.mubr.msk.f32.vlgmr.msra.gmra.mrb[2].mxu1 %vm1384_vm6, %v1383_v9 }
 0x308   : > { %1980 = vmatprep.mubr.f32.mxu1 %v2545_v0 }
 0x3d1   : > { %v1538_v32 = vpop.f32.mrb[4].mxu0 }
 0x3d2   : > { %v1543_v44 = vadd.f32 %v3216_v18, %v1538_v32  ;;  %v1540_v14 = vpop.f32.mrb[5].mxu0 }
 0x3d3   : > { %v1544_v29 = vadd.f32 %v3211_v56, %v1540_v14 }
 0x3d4   : > { %v1549_v43 = vadd.f32 %v1547_v15, %v1543_v44 }
 0x3d5   : > { %v1550_v22 = vadd.f32 %v1547_v15, %v1544_v29  ;;  %v1635_v48 = vpop.f32.mrb[6].mxu0 }
 0x3d6   : > { %v1551_v13 = vmax.f32 %v1549_v43, 0.0  ;;  %v1637_v35 = vpop.f32.mrb[7].mxu0  ;;  %v1636_v52 = vadd.f32 %v1635_v48, %v1555_v20 }
 0x3d7   : > { %v1552_v60 = vmax.f32 %v1550_v22, 0.0  ;;  %v1638_v7 = vadd.f32 %v1637_v35, %v1555_v20 }
 0x3d9   : > { %2062 = vmatprep.subr.msk.mxu0 %vm1562_vm8, %v1552_v60 }
 0x3da   : > { %2063 = vmatpush1.msk.msra.mxu0 %vm1562_vm8, %v1551_v13  ;;  %v1453_v42 = vpop.f32.mrb[2].mxu1 }
 0x3db   : > { %2064 = vmatmul.mubr.msk.f32.vlgmr.msra.gmra.mrb[8].mxu0 %vm1559_vm5, %v1641_v24  ;;  %v1458_v40 = vadd.f32 %v3216_v18, %v1453_v42  ;;  %v1455_v53 = vpop.f32.mrb[3].mxu1 }
 0x3dc   : > { %1795 = vmatprep.mubr.f32.mxu0 %v2545_v0  ;;  %v1459_v36 = vadd.f32 %v3211_v56, %v1455_v53 }
 0x3dd   : > { %v1464_v10 = vadd.f32 %v1462_v26, %v1458_v40 }
 0x3de   : > { %v1465_v23 = vadd.f32 %v1462_v26, %v1459_v36 }
 0x3df   : > { %v1466_v5 = vmax.f32 %v1464_v10, 0.0 }
 0x3e0   : > { %v1467_v3 = vmax.f32 %v1465_v23, 0.0 }
 0x3e2   : > { %2065 = vmatprep.subr.msk.mxu0 %vm1562_vm8, %v1467_v3 }
 0x3e3   : > { %2066 = vmatpush1.msk.msra.mxu0 %vm1562_vm8, %v1466_v5 }
 0x3e4   : > { %2067 = vmatmul.mubr.msk.f32.vlgmr.msra.gmra.mrb[8].mxu0 %vm1559_vm5, %v1722_v31  ;;  %2068 = vmatprep.subr.msk.mxu0 %vm1562_vm8, %v1638_v7 }
 0x3e5   : > { %2069 = vmatpush1.msk.msra.mxu0 %vm1562_vm8, %v1636_v52  ;;  %1876 = vmatprep.mubr.f32.mxu0 %v2545_v0 }
 0x3ec   : > { %2070 = vmatmul.mubr.msk.f32.vlgmr.msra.gmra.mrb[8].mxu0 %vm1559_vm5, %v1803_v41 }
 0x4bf   : > { %v1878_v45 = vpop.f32.mrb[8].mxu0 }
 0x4c0   : > { %v1889_v37 = vadd.f32 %v1887_v61, %v1878_v45  ;;  %v1880_v51 = vpop.f32.mrb[9].mxu0 }
 0x4c1   : > { %v1890_v55 = vadd.f32 %v1887_v61, %v1880_v51 }
 0x4c2   : > { %v1891_v30 = vadd.f32 %v3216_v18, %v1889_v37 }
 0x4c3   : > { %v1892_v46 = vadd.f32 %v3211_v56, %v1890_v55 }
 0x4c4   : > { %v1893_v0 = vmax.f32 %v1891_v30, 0.0 }
 0x4c5   : > { %v1894_v47 = vmax.f32 %v1892_v46, 0.0 }
 0x4c7   : > { %2071 = vmatprep.subr.msk.mxu1 %vm1562_vm8, %v1894_v47 }
 0x4c8   : > { %2072 = vmatpush1.msk.msra.mxu1 %vm1562_vm8, %v1893_v0 }
 0x4c9   : > { %2073 = vmatmul.mubr.msk.f32.vlgmr.msra.gmra.mrb[4].mxu1 %vm1559_vm5, %v1907_v59 }
 0x59c   : > { %v1982_v28 = vpop.f32.mrb[4].mxu1 }
 0x59d   : > { %v1983_v58 = vadd.f32 %v1982_v28, %v1900_v2  ;;  %v1984_v16 = vpop.f32.mrb[5].mxu1 }
 0x59e   : > { %v1985_v17 = vadd.f32 %v1984_v16, %v1900_v2 }
 0x59f   : > { %1987 = vst [vmem:[%s145_s5] sm:$0xff] %v1983_v58 }
 0x5a0   : > { %1988 = vst [vmem:[%s145_s5 + $0x8] sm:$0xff] %v1985_v17 }
 0x5a1 PF: > { %s12_s9 = sadd.s32 1, %s2543_s9  }
 0x5a2   : > { %p9_p4 = scmp.ge.s32.totalorder %s12_s9, 4  }
 0x5a4   :  { %11 = sbr.rel (!%p9_p4) target bundleno = 1 (0x1), region = 58 }

</bundles_post_ra>
